<compile_context>
chip_gen: v7x
topology: tpu7x:2x2x1
jax: 0.10.0
libtpu: 0.0.40
codegen_flags: <defaults>
</compile_context>

<pallas_src>
import jax
import jax.numpy as jnp
from jax.experimental import pallas as pl
from jax.experimental.pallas import tpu as pltpu

# Small, BERT-like config.
B, S, H = 2, 8, 32          # batch, seq, hidden
NH = 2                      # attention heads
DH = H // NH                # head dim
I = 64                      # MLP intermediate size
VOCAB = 100
LAYERS = 2


def _layernorm(x, g, b, eps=1e-12):
    mu = jnp.mean(x, axis=-1, keepdims=True)
    var = jnp.mean((x - mu) ** 2, axis=-1, keepdims=True)
    return (x - mu) * jax.lax.rsqrt(var + eps) * g + b


def _bf16(x):
    return x.astype(jnp.bfloat16)


# ---------------------------------------------------------------------------
# Fused Pallas kernel: embedding LN + LAYERS transformer layers + CLS output.
# One grid step == one batch row ((S, H) slab resident in VMEM/vregs).
# ---------------------------------------------------------------------------
def fused_bert_kernel(x_ref, amask_ref, embg_ref, embb_ref,
                      wqkv_ref, bqkv_ref, wo_ref, bo_ref,
                      ln1g_ref, ln1b_ref, w1_ref, b1_ref, w2_ref, b2_ref,
                      ln2g_ref, ln2b_ref, cls_ref):
    amask = amask_ref[...]                                          # (S, S), pre-broadcast in wrapper
    x = _layernorm(x_ref[...], embg_ref[...], embb_ref[...])        # (S, H) f32

    for l in range(LAYERS):                                         # static unroll, weights resident
        last = (l == LAYERS - 1)
        # Last layer: only the CLS query row feeds the output.
        x_q = x[0:1, :] if last else x                              # (Q, H), Q = 1 or S
        amask_q = amask[0:1, :] if last else amask                  # (Q, S)
        x_bf, xq_bf = _bf16(x), _bf16(x_q)

        attn = jnp.zeros((x_q.shape[0], H), jnp.float32)
        for h in range(NH):                                         # tiny static head unroll
            # Per-head projections straight from pre-split weights: no lane-offset slicing.
            q = jnp.dot(xq_bf, wqkv_ref[l, 0, h],
                        preferred_element_type=jnp.float32) + bqkv_ref[l, 0, h]   # (Q, DH)
            k = jnp.dot(x_bf, wqkv_ref[l, 1, h],
                        preferred_element_type=jnp.float32) + bqkv_ref[l, 1, h]   # (S, DH)
            v = jnp.dot(x_bf, wqkv_ref[l, 2, h],
                        preferred_element_type=jnp.float32) + bqkv_ref[l, 2, h]   # (S, DH)

            # Scores q @ k^T (1/sqrt(DH) already folded into Wq/bq at init).
            sc = jax.lax.dot_general(_bf16(q), _bf16(k), (((1,), (1,)), ((), ())),
                                     preferred_element_type=jnp.float32)          # (Q, S)
            sc = sc + amask_q
            sc = sc - jnp.max(sc, axis=-1, keepdims=True)
            p = jnp.exp(sc)                                                        # f32 softmax
            p = p * pl.reciprocal(jnp.sum(p, axis=-1, keepdims=True), approx=True)

            ctx = jnp.dot(_bf16(p), _bf16(v),
                          preferred_element_type=jnp.float32)                      # (Q, DH)
            # Per-head output projection accumulated: no lane-axis head concat.
            attn = attn + jnp.dot(_bf16(ctx), wo_ref[l, h],
                                  preferred_element_type=jnp.float32)              # (Q, H)
        attn = attn + bo_ref[l]

        h1 = _layernorm(x_q + attn, ln1g_ref[l], ln1b_ref[l])                      # f32
        ff = jnp.dot(_bf16(h1), w1_ref[l], preferred_element_type=jnp.float32) + b1_ref[l]
        # TODO(synk): HF BERT uses exact (erf) GELU; tanh approximation used here.
        ff = jax.nn.gelu(ff, approximate=True)                                     # f32
        ff = jnp.dot(_bf16(ff), w2_ref[l], preferred_element_type=jnp.float32) + b2_ref[l]
        x = _layernorm(h1 + ff, ln2g_ref[l], ln2b_ref[l])

    cls_ref[...] = x        # (1, H): direct CLS store, no strided gather


# ---------------------------------------------------------------------------
# Wrapper
# ---------------------------------------------------------------------------
def _shared_spec(shape):
    """Full-array BlockSpec reused by every grid step (weights)."""
    return pl.BlockSpec(shape, lambda b: (0,) * len(shape))


def similarity_classifier_forward(input_ids, attention_mask, params):
    # Embedding gather + positional/type add: glue in plain JAX (data-dependent gather).
    x = jnp.take(params["word_emb"], input_ids, axis=0)                       # (B, S, H)
    x = x + params["pos_emb"][None, :, :] + params["type_emb"][None, 0:1, :]
    # token_type_ids are implicitly all zeros (reference forward() never passes them).

    # Additive key mask, broadcast ONCE in the wrapper and reused by every layer/head.
    amask = jnp.broadcast_to(
        ((1.0 - attention_mask.astype(jnp.float32)) * -1e9)[:, None, :], (B, S, S))

    weight_args = (params["emb_ln_g"], params["emb_ln_b"],
                   params["wqkv"], params["bqkv"], params["wo"], params["bo"],
                   params["ln1g"], params["ln1b"], params["w1"], params["b1"],
                   params["w2"], params["b2"], params["ln2g"], params["ln2b"])

    cls = pl.pallas_call(
        fused_bert_kernel,
        out_shape=jax.ShapeDtypeStruct((B, 1, H), jnp.float32),
        grid_spec=pltpu.PrefetchScalarGridSpec(
            num_scalar_prefetch=0,
            grid=(B,),
            in_specs=[pl.BlockSpec((None, S, H), lambda b: (b, 0, 0)),   # activations: one batch row / step
                      pl.BlockSpec((None, S, S), lambda b: (b, 0, 0))]   # pre-broadcast mask
                     + [_shared_spec(w.shape) for w in weight_args],
            out_specs=pl.BlockSpec((None, 1, H), lambda b: (b, 0, 0)),
        ),
        # Batch axis sharded across TensorCores on v7x; no-op on v5e/v6e.
        compiler_params=pltpu.CompilerParams(dimension_semantics=("parallel",)),
    )(x, amask, *weight_args)
    return cls.reshape(B, H)


# ---------------------------------------------------------------------------
# Deterministic parameter init (synthetic weights, not a checkpoint)
# ---------------------------------------------------------------------------
def init_params(key):
    keys = iter(jax.random.split(key, 3 + 6 * LAYERS))

    def dense(shape, scale=0.02):
        return scale * jax.random.normal(next(keys), shape, dtype=jnp.float32)

    att_scale = 1.0 / (DH ** 0.5)
    split_out = lambda w: w.reshape(H, NH, DH).transpose(1, 0, 2)   # (H,H) -> (NH,H,DH)
    split_in = lambda w: w.reshape(NH, DH, H)                       # (H,H) -> (NH,DH,H)

    params = {
        "word_emb": dense((VOCAB, H)),
        "pos_emb": dense((S, H)),
        "type_emb": dense((1, H)),
        "emb_ln_g": jnp.ones((1, H), jnp.float32),
        "emb_ln_b": jnp.zeros((1, H), jnp.float32),
    }

    wqkv, bqkv, wo, bo = [], [], [], []
    ln1g, ln1b, w1, b1, w2, b2, ln2g, ln2b = ([] for _ in range(8))
    for _ in range(LAYERS):
        wq, wk, wv = dense((H, H)), dense((H, H)), dense((H, H))
        bq, bk, bv = (jnp.zeros((H,), jnp.float32) for _ in range(3))
        # Fold 1/sqrt(DH) into the q projection (zero per-step cost in the kernel).
        wq, bq = wq * att_scale, bq * att_scale
        wqkv.append(jnp.stack([split_out(wq), split_out(wk), split_out(wv)], axis=0))  # (3,NH,H,DH)
        bqkv.append(jnp.stack([bq.reshape(NH, 1, DH), bk.reshape(NH, 1, DH),
                               bv.reshape(NH, 1, DH)], axis=0))                        # (3,NH,1,DH)
        wo.append(split_in(dense((H, H))))                                             # (NH,DH,H)
        bo.append(jnp.zeros((1, H), jnp.float32))
        ln1g.append(jnp.ones((1, H), jnp.float32)); ln1b.append(jnp.zeros((1, H), jnp.float32))
        w1.append(dense((H, I))); b1.append(jnp.zeros((1, I), jnp.float32))
        w2.append(dense((I, H))); b2.append(jnp.zeros((1, H), jnp.float32))
        ln2g.append(jnp.ones((1, H), jnp.float32)); ln2b.append(jnp.zeros((1, H), jnp.float32))

    stack = lambda xs: jnp.stack(xs, axis=0)           # leading (LAYERS, ...) axis
    bf16 = lambda x: x.astype(jnp.bfloat16)            # MXU operands in bf16
    params.update(
        wqkv=bf16(stack(wqkv)), bqkv=stack(bqkv),
        wo=bf16(stack(wo)), bo=stack(bo),
        ln1g=stack(ln1g), ln1b=stack(ln1b),
        w1=bf16(stack(w1)), b1=stack(b1),
        w2=bf16(stack(w2)), b2=stack(b2),
        ln2g=stack(ln2g), ln2b=stack(ln2b),
    )
    return params


if __name__ == "__main__":
    key = jax.random.PRNGKey(0)
    k_ids, k_p = jax.random.split(key)

    input_ids = jax.random.randint(k_ids, (B, S), 0, VOCAB, dtype=jnp.int32)
    attention_mask = jnp.ones((B, S), dtype=jnp.float32)
    attention_mask = attention_mask.at[1, 6:].set(0.0)   # ragged mask example

    params = init_params(k_p)

    fwd = jax.jit(similarity_classifier_forward)
    out = jax.block_until_ready(fwd(input_ids, attention_mask, params))
    assert out.shape == (B, H) and out.dtype == jnp.float32
    print("KERNEL_OK")
</pallas_src>

<mosaic_0001>
module attributes {stable_mosaic.version = 11 : i64} {
  func.func @fused_bert_kernel(%arg0: i32, %arg1: memref<1x8x32xf32, #tpu.memory_space<vmem>>, %arg2: memref<1x8x8xf32, #tpu.memory_space<vmem>>, %arg3: memref<1x32xf32, #tpu.memory_space<vmem>>, %arg4: memref<1x32xf32, #tpu.memory_space<vmem>>, %arg5: memref<2x3x2x32x16xbf16, #tpu.memory_space<vmem>>, %arg6: memref<2x3x2x1x16xf32, #tpu.memory_space<vmem>>, %arg7: memref<2x2x16x32xbf16, #tpu.memory_space<vmem>>, %arg8: memref<2x1x32xf32, #tpu.memory_space<vmem>>, %arg9: memref<2x1x32xf32, #tpu.memory_space<vmem>>, %arg10: memref<2x1x32xf32, #tpu.memory_space<vmem>>, %arg11: memref<2x32x64xbf16, #tpu.memory_space<vmem>>, %arg12: memref<2x1x64xf32, #tpu.memory_space<vmem>>, %arg13: memref<2x64x32xbf16, #tpu.memory_space<vmem>>, %arg14: memref<2x1x32xf32, #tpu.memory_space<vmem>>, %arg15: memref<2x1x32xf32, #tpu.memory_space<vmem>>, %arg16: memref<2x1x32xf32, #tpu.memory_space<vmem>>, %arg17: memref<1x1x32xf32, #tpu.memory_space<vmem>>) attributes {dimension_semantics = [#tpu.dimension_semantics<parallel>], iteration_bounds = array<i64: 2>, scalar_prefetch = 0 : i64, scratch_operands = 0 : i64, tpu.core_type = #tpu.core_type<tc>, window_params = [{transform_indices = @transform_0, window_bounds = array<i64: 1, 8, 32>}, {transform_indices = @transform_1, window_bounds = array<i64: 1, 8, 8>}, {pipeline_mode = #tpu.pipeline_mode<synchronous>, transform_indices = @transform_2, window_bounds = array<i64: 1, 32>}, {pipeline_mode = #tpu.pipeline_mode<synchronous>, transform_indices = @transform_3, window_bounds = array<i64: 1, 32>}, {pipeline_mode = #tpu.pipeline_mode<synchronous>, transform_indices = @transform_4, window_bounds = array<i64: 2, 3, 2, 32, 16>}, {pipeline_mode = #tpu.pipeline_mode<synchronous>, transform_indices = @transform_5, window_bounds = array<i64: 2, 3, 2, 1, 16>}, {pipeline_mode = #tpu.pipeline_mode<synchronous>, transform_indices = @transform_6, window_bounds = array<i64: 2, 2, 16, 32>}, {pipeline_mode = #tpu.pipeline_mode<synchronous>, transform_indices = @transform_7, window_bounds = array<i64: 2, 1, 32>}, {pipeline_mode = #tpu.pipeline_mode<synchronous>, transform_indices = @transform_8, window_bounds = array<i64: 2, 1, 32>}, {pipeline_mode = #tpu.pipeline_mode<synchronous>, transform_indices = @transform_9, window_bounds = array<i64: 2, 1, 32>}, {pipeline_mode = #tpu.pipeline_mode<synchronous>, transform_indices = @transform_10, window_bounds = array<i64: 2, 32, 64>}, {pipeline_mode = #tpu.pipeline_mode<synchronous>, transform_indices = @transform_11, window_bounds = array<i64: 2, 1, 64>}, {pipeline_mode = #tpu.pipeline_mode<synchronous>, transform_indices = @transform_12, window_bounds = array<i64: 2, 64, 32>}, {pipeline_mode = #tpu.pipeline_mode<synchronous>, transform_indices = @transform_13, window_bounds = array<i64: 2, 1, 32>}, {pipeline_mode = #tpu.pipeline_mode<synchronous>, transform_indices = @transform_14, window_bounds = array<i64: 2, 1, 32>}, {pipeline_mode = #tpu.pipeline_mode<synchronous>, transform_indices = @transform_15, window_bounds = array<i64: 2, 1, 32>}, {transform_indices = @transform_16, window_bounds = array<i64: 1, 1, 32>}]} {
    %c0 = arith.constant 0 : index
    %c0_0 = arith.constant 0 : index
    %c0_1 = arith.constant 0 : index
    %0 = vector.load %arg2[%c0, %c0_0, %c0_1] : memref<1x8x8xf32, #tpu.memory_space<vmem>>, vector<1x8x8xf32>
    %1 = vector.shape_cast %0 : vector<1x8x8xf32> to vector<8x8xf32>
    %c0_2 = arith.constant 0 : index
    %c0_3 = arith.constant 0 : index
    %c0_4 = arith.constant 0 : index
    %2 = vector.load %arg1[%c0_2, %c0_3, %c0_4] : memref<1x8x32xf32, #tpu.memory_space<vmem>>, vector<1x8x32xf32>
    %3 = vector.shape_cast %2 : vector<1x8x32xf32> to vector<8x32xf32>
    %c0_5 = arith.constant 0 : index
    %c0_6 = arith.constant 0 : index
    %4 = vector.load %arg3[%c0_5, %c0_6] : memref<1x32xf32, #tpu.memory_space<vmem>>, vector<1x32xf32>
    %c0_7 = arith.constant 0 : index
    %c0_8 = arith.constant 0 : index
    %5 = vector.load %arg4[%c0_7, %c0_8] : memref<1x32xf32, #tpu.memory_space<vmem>>, vector<1x32xf32>
    %cst = arith.constant dense<0.000000e+00> : vector<8xf32>
    %6 = vector.multi_reduction <add>, %3, %cst [1] : vector<8x32xf32> to vector<8xf32>
    %7 = vector.shape_cast %6 : vector<8xf32> to vector<8x1xf32>
    %cst_9 = arith.constant 3.200000e+01 : f32
    %8 = vector.broadcast %cst_9 : f32 to vector<8x1xf32>
    %9 = arith.divf %7, %8 : vector<8x1xf32>
    %10 = vector.broadcast %9 : vector<8x1xf32> to vector<8x32xf32>
    %11 = arith.subf %3, %10 : vector<8x32xf32>
    %12 = arith.mulf %11, %11 : vector<8x32xf32>
    %cst_10 = arith.constant dense<0.000000e+00> : vector<8xf32>
    %13 = vector.multi_reduction <add>, %12, %cst_10 [1] : vector<8x32xf32> to vector<8xf32>
    %14 = vector.shape_cast %13 : vector<8xf32> to vector<8x1xf32>
    %cst_11 = arith.constant 3.200000e+01 : f32
    %15 = vector.broadcast %cst_11 : f32 to vector<8x1xf32>
    %16 = arith.divf %14, %15 : vector<8x1xf32>
    %17 = vector.broadcast %9 : vector<8x1xf32> to vector<8x32xf32>
    %18 = arith.subf %3, %17 : vector<8x32xf32>
    %cst_12 = arith.constant 9.99999996E-13 : f32
    %19 = vector.broadcast %cst_12 : f32 to vector<8x1xf32>
    %20 = arith.addf %16, %19 : vector<8x1xf32>
    %21 = math.rsqrt %20 : vector<8x1xf32>
    %22 = vector.broadcast %21 : vector<8x1xf32> to vector<8x32xf32>
    %23 = arith.mulf %18, %22 : vector<8x32xf32>
    %24 = vector.broadcast %4 : vector<1x32xf32> to vector<8x32xf32>
    %25 = arith.mulf %23, %24 : vector<8x32xf32>
    %26 = vector.broadcast %5 : vector<1x32xf32> to vector<8x32xf32>
    %27 = arith.addf %25, %26 : vector<8x32xf32>
    %28 = arith.truncf %27 : vector<8x32xf32> to vector<8x32xbf16>
    %29 = arith.truncf %27 : vector<8x32xf32> to vector<8x32xbf16>
    %cst_13 = arith.constant 0.000000e+00 : f32
    %30 = vector.broadcast %cst_13 : f32 to vector<8x32xf32>
    %c0_14 = arith.constant 0 : index
    %c0_15 = arith.constant 0 : index
    %c0_16 = arith.constant 0 : index
    %c0_17 = arith.constant 0 : index
    %c0_18 = arith.constant 0 : index
    %31 = vector.load %arg5[%c0_14, %c0_15, %c0_16, %c0_17, %c0_18] : memref<2x3x2x32x16xbf16, #tpu.memory_space<vmem>>, vector<1x1x1x32x16xbf16>
    %32 = vector.shape_cast %31 : vector<1x1x1x32x16xbf16> to vector<32x16xbf16>
    %cst_19 = arith.constant dense<0.000000e+00> : vector<8x16xf32>
    %33 = tpu.matmul %29, %32, %cst_19 {dimension_numbers = #tpu.dot_dimension_numbers<[1], [0], [0], [1], [0, 0, 1, 1], [], []>} : vector<8x32xbf16>, vector<32x16xbf16>, vector<8x16xf32> -> vector<8x16xf32>
    %c0_20 = arith.constant 0 : index
    %c0_21 = arith.constant 0 : index
    %c0_22 = arith.constant 0 : index
    %c0_23 = arith.constant 0 : index
    %c0_24 = arith.constant 0 : index
    %34 = vector.load %arg6[%c0_20, %c0_21, %c0_22, %c0_23, %c0_24] : memref<2x3x2x1x16xf32, #tpu.memory_space<vmem>>, vector<1x1x1x1x16xf32>
    %35 = vector.shape_cast %34 : vector<1x1x1x1x16xf32> to vector<1x16xf32>
    %36 = vector.broadcast %35 : vector<1x16xf32> to vector<8x16xf32>
    %37 = arith.addf %33, %36 : vector<8x16xf32>
    %c0_25 = arith.constant 0 : index
    %c1 = arith.constant 1 : index
    %c0_26 = arith.constant 0 : index
    %c0_27 = arith.constant 0 : index
    %c0_28 = arith.constant 0 : index
    %38 = vector.load %arg5[%c0_25, %c1, %c0_26, %c0_27, %c0_28] : memref<2x3x2x32x16xbf16, #tpu.memory_space<vmem>>, vector<1x1x1x32x16xbf16>
    %39 = vector.shape_cast %38 : vector<1x1x1x32x16xbf16> to vector<32x16xbf16>
    %cst_29 = arith.constant dense<0.000000e+00> : vector<8x16xf32>
    %40 = tpu.matmul %28, %39, %cst_29 {dimension_numbers = #tpu.dot_dimension_numbers<[1], [0], [0], [1], [0, 0, 1, 1], [], []>} : vector<8x32xbf16>, vector<32x16xbf16>, vector<8x16xf32> -> vector<8x16xf32>
    %c0_30 = arith.constant 0 : index
    %c1_31 = arith.constant 1 : index
    %c0_32 = arith.constant 0 : index
    %c0_33 = arith.constant 0 : index
    %c0_34 = arith.constant 0 : index
    %41 = vector.load %arg6[%c0_30, %c1_31, %c0_32, %c0_33, %c0_34] : memref<2x3x2x1x16xf32, #tpu.memory_space<vmem>>, vector<1x1x1x1x16xf32>
    %42 = vector.shape_cast %41 : vector<1x1x1x1x16xf32> to vector<1x16xf32>
    %43 = vector.broadcast %42 : vector<1x16xf32> to vector<8x16xf32>
    %44 = arith.addf %40, %43 : vector<8x16xf32>
    %c0_35 = arith.constant 0 : index
    %c2 = arith.constant 2 : index
    %c0_36 = arith.constant 0 : index
    %c0_37 = arith.constant 0 : index
    %c0_38 = arith.constant 0 : index
    %45 = vector.load %arg5[%c0_35, %c2, %c0_36, %c0_37, %c0_38] : memref<2x3x2x32x16xbf16, #tpu.memory_space<vmem>>, vector<1x1x1x32x16xbf16>
    %46 = vector.shape_cast %45 : vector<1x1x1x32x16xbf16> to vector<32x16xbf16>
    %cst_39 = arith.constant dense<0.000000e+00> : vector<8x16xf32>
    %47 = tpu.matmul %28, %46, %cst_39 {dimension_numbers = #tpu.dot_dimension_numbers<[1], [0], [0], [1], [0, 0, 1, 1], [], []>} : vector<8x32xbf16>, vector<32x16xbf16>, vector<8x16xf32> -> vector<8x16xf32>
    %c0_40 = arith.constant 0 : index
    %c2_41 = arith.constant 2 : index
    %c0_42 = arith.constant 0 : index
    %c0_43 = arith.constant 0 : index
    %c0_44 = arith.constant 0 : index
    %48 = vector.load %arg6[%c0_40, %c2_41, %c0_42, %c0_43, %c0_44] : memref<2x3x2x1x16xf32, #tpu.memory_space<vmem>>, vector<1x1x1x1x16xf32>
    %49 = vector.shape_cast %48 : vector<1x1x1x1x16xf32> to vector<1x16xf32>
    %50 = vector.broadcast %49 : vector<1x16xf32> to vector<8x16xf32>
    %51 = arith.addf %47, %50 : vector<8x16xf32>
    %52 = arith.truncf %37 : vector<8x16xf32> to vector<8x16xbf16>
    %53 = arith.truncf %44 : vector<8x16xf32> to vector<8x16xbf16>
    %cst_45 = arith.constant dense<0.000000e+00> : vector<8x8xf32>
    %54 = tpu.matmul %52, %53, %cst_45 {dimension_numbers = #tpu.dot_dimension_numbers<[1], [1], [0], [0], [0, 0, 1, 0], [], []>} : vector<8x16xbf16>, vector<8x16xbf16>, vector<8x8xf32> -> vector<8x8xf32>
    %55 = arith.addf %54, %1 : vector<8x8xf32>
    %cst_46 = arith.constant dense<0xFF800000> : vector<8xf32>
    %56 = vector.multi_reduction <maximumf>, %55, %cst_46 [1] : vector<8x8xf32> to vector<8xf32>
    %57 = vector.shape_cast %56 : vector<8xf32> to vector<8x1xf32>
    %58 = vector.broadcast %57 : vector<8x1xf32> to vector<8x8xf32>
    %59 = arith.subf %55, %58 : vector<8x8xf32>
    %60 = math.exp %59 : vector<8x8xf32>
    %cst_47 = arith.constant dense<0.000000e+00> : vector<8xf32>
    %61 = vector.multi_reduction <add>, %60, %cst_47 [1] : vector<8x8xf32> to vector<8xf32>
    %62 = vector.shape_cast %61 : vector<8xf32> to vector<8x1xf32>
    %63 = tpu.reciprocal %62 {approx = true} : vector<8x1xf32> -> vector<8x1xf32>
    %64 = vector.broadcast %63 : vector<8x1xf32> to vector<8x8xf32>
    %65 = arith.mulf %60, %64 : vector<8x8xf32>
    %66 = arith.truncf %65 : vector<8x8xf32> to vector<8x8xbf16>
    %67 = arith.truncf %51 : vector<8x16xf32> to vector<8x16xbf16>
    %cst_48 = arith.constant dense<0.000000e+00> : vector<8x16xf32>
    %68 = tpu.matmul %66, %67, %cst_48 {dimension_numbers = #tpu.dot_dimension_numbers<[1], [0], [0], [1], [0, 0, 1, 1], [], []>} : vector<8x8xbf16>, vector<8x16xbf16>, vector<8x16xf32> -> vector<8x16xf32>
    %69 = arith.truncf %68 : vector<8x16xf32> to vector<8x16xbf16>
    %c0_49 = arith.constant 0 : index
    %c0_50 = arith.constant 0 : index
    %c0_51 = arith.constant 0 : index
    %c0_52 = arith.constant 0 : index
    %70 = vector.load %arg7[%c0_49, %c0_50, %c0_51, %c0_52] : memref<2x2x16x32xbf16, #tpu.memory_space<vmem>>, vector<1x1x16x32xbf16>
    %71 = vector.shape_cast %70 : vector<1x1x16x32xbf16> to vector<16x32xbf16>
    %cst_53 = arith.constant dense<0.000000e+00> : vector<8x32xf32>
    %72 = tpu.matmul %69, %71, %cst_53 {dimension_numbers = #tpu.dot_dimension_numbers<[1], [0], [0], [1], [0, 0, 1, 1], [], []>} : vector<8x16xbf16>, vector<16x32xbf16>, vector<8x32xf32> -> vector<8x32xf32>
    %73 = arith.addf %30, %72 : vector<8x32xf32>
    %c0_54 = arith.constant 0 : index
    %c0_55 = arith.constant 0 : index
    %c1_56 = arith.constant 1 : index
    %c0_57 = arith.constant 0 : index
    %c0_58 = arith.constant 0 : index
    %74 = vector.load %arg5[%c0_54, %c0_55, %c1_56, %c0_57, %c0_58] : memref<2x3x2x32x16xbf16, #tpu.memory_space<vmem>>, vector<1x1x1x32x16xbf16>
    %75 = vector.shape_cast %74 : vector<1x1x1x32x16xbf16> to vector<32x16xbf16>
    %cst_59 = arith.constant dense<0.000000e+00> : vector<8x16xf32>
    %76 = tpu.matmul %29, %75, %cst_59 {dimension_numbers = #tpu.dot_dimension_numbers<[1], [0], [0], [1], [0, 0, 1, 1], [], []>} : vector<8x32xbf16>, vector<32x16xbf16>, vector<8x16xf32> -> vector<8x16xf32>
    %c0_60 = arith.constant 0 : index
    %c0_61 = arith.constant 0 : index
    %c1_62 = arith.constant 1 : index
    %c0_63 = arith.constant 0 : index
    %c0_64 = arith.constant 0 : index
    %77 = vector.load %arg6[%c0_60, %c0_61, %c1_62, %c0_63, %c0_64] : memref<2x3x2x1x16xf32, #tpu.memory_space<vmem>>, vector<1x1x1x1x16xf32>
    %78 = vector.shape_cast %77 : vector<1x1x1x1x16xf32> to vector<1x16xf32>
    %79 = vector.broadcast %78 : vector<1x16xf32> to vector<8x16xf32>
    %80 = arith.addf %76, %79 : vector<8x16xf32>
    %c0_65 = arith.constant 0 : index
    %c1_66 = arith.constant 1 : index
    %c1_67 = arith.constant 1 : index
    %c0_68 = arith.constant 0 : index
    %c0_69 = arith.constant 0 : index
    %81 = vector.load %arg5[%c0_65, %c1_66, %c1_67, %c0_68, %c0_69] : memref<2x3x2x32x16xbf16, #tpu.memory_space<vmem>>, vector<1x1x1x32x16xbf16>
    %82 = vector.shape_cast %81 : vector<1x1x1x32x16xbf16> to vector<32x16xbf16>
    %cst_70 = arith.constant dense<0.000000e+00> : vector<8x16xf32>
    %83 = tpu.matmul %28, %82, %cst_70 {dimension_numbers = #tpu.dot_dimension_numbers<[1], [0], [0], [1], [0, 0, 1, 1], [], []>} : vector<8x32xbf16>, vector<32x16xbf16>, vector<8x16xf32> -> vector<8x16xf32>
    %c0_71 = arith.constant 0 : index
    %c1_72 = arith.constant 1 : index
    %c1_73 = arith.constant 1 : index
    %c0_74 = arith.constant 0 : index
    %c0_75 = arith.constant 0 : index
    %84 = vector.load %arg6[%c0_71, %c1_72, %c1_73, %c0_74, %c0_75] : memref<2x3x2x1x16xf32, #tpu.memory_space<vmem>>, vector<1x1x1x1x16xf32>
    %85 = vector.shape_cast %84 : vector<1x1x1x1x16xf32> to vector<1x16xf32>
    %86 = vector.broadcast %85 : vector<1x16xf32> to vector<8x16xf32>
    %87 = arith.addf %83, %86 : vector<8x16xf32>
    %c0_76 = arith.constant 0 : index
    %c2_77 = arith.constant 2 : index
    %c1_78 = arith.constant 1 : index
    %c0_79 = arith.constant 0 : index
    %c0_80 = arith.constant 0 : index
    %88 = vector.load %arg5[%c0_76, %c2_77, %c1_78, %c0_79, %c0_80] : memref<2x3x2x32x16xbf16, #tpu.memory_space<vmem>>, vector<1x1x1x32x16xbf16>
    %89 = vector.shape_cast %88 : vector<1x1x1x32x16xbf16> to vector<32x16xbf16>
    %cst_81 = arith.constant dense<0.000000e+00> : vector<8x16xf32>
    %90 = tpu.matmul %28, %89, %cst_81 {dimension_numbers = #tpu.dot_dimension_numbers<[1], [0], [0], [1], [0, 0, 1, 1], [], []>} : vector<8x32xbf16>, vector<32x16xbf16>, vector<8x16xf32> -> vector<8x16xf32>
    %c0_82 = arith.constant 0 : index
    %c2_83 = arith.constant 2 : index
    %c1_84 = arith.constant 1 : index
    %c0_85 = arith.constant 0 : index
    %c0_86 = arith.constant 0 : index
    %91 = vector.load %arg6[%c0_82, %c2_83, %c1_84, %c0_85, %c0_86] : memref<2x3x2x1x16xf32, #tpu.memory_space<vmem>>, vector<1x1x1x1x16xf32>
    %92 = vector.shape_cast %91 : vector<1x1x1x1x16xf32> to vector<1x16xf32>
    %93 = vector.broadcast %92 : vector<1x16xf32> to vector<8x16xf32>
    %94 = arith.addf %90, %93 : vector<8x16xf32>
    %95 = arith.truncf %80 : vector<8x16xf32> to vector<8x16xbf16>
    %96 = arith.truncf %87 : vector<8x16xf32> to vector<8x16xbf16>
    %cst_87 = arith.constant dense<0.000000e+00> : vector<8x8xf32>
    %97 = tpu.matmul %95, %96, %cst_87 {dimension_numbers = #tpu.dot_dimension_numbers<[1], [1], [0], [0], [0, 0, 1, 0], [], []>} : vector<8x16xbf16>, vector<8x16xbf16>, vector<8x8xf32> -> vector<8x8xf32>
    %98 = arith.addf %97, %1 : vector<8x8xf32>
    %cst_88 = arith.constant dense<0xFF800000> : vector<8xf32>
    %99 = vector.multi_reduction <maximumf>, %98, %cst_88 [1] : vector<8x8xf32> to vector<8xf32>
    %100 = vector.shape_cast %99 : vector<8xf32> to vector<8x1xf32>
    %101 = vector.broadcast %100 : vector<8x1xf32> to vector<8x8xf32>
    %102 = arith.subf %98, %101 : vector<8x8xf32>
    %103 = math.exp %102 : vector<8x8xf32>
    %cst_89 = arith.constant dense<0.000000e+00> : vector<8xf32>
    %104 = vector.multi_reduction <add>, %103, %cst_89 [1] : vector<8x8xf32> to vector<8xf32>
    %105 = vector.shape_cast %104 : vector<8xf32> to vector<8x1xf32>
    %106 = tpu.reciprocal %105 {approx = true} : vector<8x1xf32> -> vector<8x1xf32>
    %107 = vector.broadcast %106 : vector<8x1xf32> to vector<8x8xf32>
    %108 = arith.mulf %103, %107 : vector<8x8xf32>
    %109 = arith.truncf %108 : vector<8x8xf32> to vector<8x8xbf16>
    %110 = arith.truncf %94 : vector<8x16xf32> to vector<8x16xbf16>
    %cst_90 = arith.constant dense<0.000000e+00> : vector<8x16xf32>
    %111 = tpu.matmul %109, %110, %cst_90 {dimension_numbers = #tpu.dot_dimension_numbers<[1], [0], [0], [1], [0, 0, 1, 1], [], []>} : vector<8x8xbf16>, vector<8x16xbf16>, vector<8x16xf32> -> vector<8x16xf32>
    %112 = arith.truncf %111 : vector<8x16xf32> to vector<8x16xbf16>
    %c0_91 = arith.constant 0 : index
    %c1_92 = arith.constant 1 : index
    %c0_93 = arith.constant 0 : index
    %c0_94 = arith.constant 0 : index
    %113 = vector.load %arg7[%c0_91, %c1_92, %c0_93, %c0_94] : memref<2x2x16x32xbf16, #tpu.memory_space<vmem>>, vector<1x1x16x32xbf16>
    %114 = vector.shape_cast %113 : vector<1x1x16x32xbf16> to vector<16x32xbf16>
    %cst_95 = arith.constant dense<0.000000e+00> : vector<8x32xf32>
    %115 = tpu.matmul %112, %114, %cst_95 {dimension_numbers = #tpu.dot_dimension_numbers<[1], [0], [0], [1], [0, 0, 1, 1], [], []>} : vector<8x16xbf16>, vector<16x32xbf16>, vector<8x32xf32> -> vector<8x32xf32>
    %116 = arith.addf %73, %115 : vector<8x32xf32>
    %c0_96 = arith.constant 0 : index
    %c0_97 = arith.constant 0 : index
    %c0_98 = arith.constant 0 : index
    %117 = vector.load %arg8[%c0_96, %c0_97, %c0_98] : memref<2x1x32xf32, #tpu.memory_space<vmem>>, vector<1x1x32xf32>
    %118 = vector.shape_cast %117 : vector<1x1x32xf32> to vector<1x32xf32>
    %119 = vector.broadcast %118 : vector<1x32xf32> to vector<8x32xf32>
    %120 = arith.addf %116, %119 : vector<8x32xf32>
    %121 = arith.addf %27, %120 : vector<8x32xf32>
    %c0_99 = arith.constant 0 : index
    %c0_100 = arith.constant 0 : index
    %c0_101 = arith.constant 0 : index
    %122 = vector.load %arg9[%c0_99, %c0_100, %c0_101] : memref<2x1x32xf32, #tpu.memory_space<vmem>>, vector<1x1x32xf32>
    %123 = vector.shape_cast %122 : vector<1x1x32xf32> to vector<1x32xf32>
    %c0_102 = arith.constant 0 : index
    %c0_103 = arith.constant 0 : index
    %c0_104 = arith.constant 0 : index
    %124 = vector.load %arg10[%c0_102, %c0_103, %c0_104] : memref<2x1x32xf32, #tpu.memory_space<vmem>>, vector<1x1x32xf32>
    %125 = vector.shape_cast %124 : vector<1x1x32xf32> to vector<1x32xf32>
    %cst_105 = arith.constant dense<0.000000e+00> : vector<8xf32>
    %126 = vector.multi_reduction <add>, %121, %cst_105 [1] : vector<8x32xf32> to vector<8xf32>
    %127 = vector.shape_cast %126 : vector<8xf32> to vector<8x1xf32>
    %cst_106 = arith.constant 3.200000e+01 : f32
    %128 = vector.broadcast %cst_106 : f32 to vector<8x1xf32>
    %129 = arith.divf %127, %128 : vector<8x1xf32>
    %130 = vector.broadcast %129 : vector<8x1xf32> to vector<8x32xf32>
    %131 = arith.subf %121, %130 : vector<8x32xf32>
    %132 = arith.mulf %131, %131 : vector<8x32xf32>
    %cst_107 = arith.constant dense<0.000000e+00> : vector<8xf32>
    %133 = vector.multi_reduction <add>, %132, %cst_107 [1] : vector<8x32xf32> to vector<8xf32>
    %134 = vector.shape_cast %133 : vector<8xf32> to vector<8x1xf32>
    %cst_108 = arith.constant 3.200000e+01 : f32
    %135 = vector.broadcast %cst_108 : f32 to vector<8x1xf32>
    %136 = arith.divf %134, %135 : vector<8x1xf32>
    %137 = vector.broadcast %129 : vector<8x1xf32> to vector<8x32xf32>
    %138 = arith.subf %121, %137 : vector<8x32xf32>
    %cst_109 = arith.constant 9.99999996E-13 : f32
    %139 = vector.broadcast %cst_109 : f32 to vector<8x1xf32>
    %140 = arith.addf %136, %139 : vector<8x1xf32>
    %141 = math.rsqrt %140 : vector<8x1xf32>
    %142 = vector.broadcast %141 : vector<8x1xf32> to vector<8x32xf32>
    %143 = arith.mulf %138, %142 : vector<8x32xf32>
    %144 = vector.broadcast %123 : vector<1x32xf32> to vector<8x32xf32>
    %145 = arith.mulf %143, %144 : vector<8x32xf32>
    %146 = vector.broadcast %125 : vector<1x32xf32> to vector<8x32xf32>
    %147 = arith.addf %145, %146 : vector<8x32xf32>
    %148 = arith.truncf %147 : vector<8x32xf32> to vector<8x32xbf16>
    %c0_110 = arith.constant 0 : index
    %c0_111 = arith.constant 0 : index
    %c0_112 = arith.constant 0 : index
    %149 = vector.load %arg11[%c0_110, %c0_111, %c0_112] : memref<2x32x64xbf16, #tpu.memory_space<vmem>>, vector<1x32x64xbf16>
    %150 = vector.shape_cast %149 : vector<1x32x64xbf16> to vector<32x64xbf16>
    %cst_113 = arith.constant dense<0.000000e+00> : vector<8x64xf32>
    %151 = tpu.matmul %148, %150, %cst_113 {dimension_numbers = #tpu.dot_dimension_numbers<[1], [0], [0], [1], [0, 0, 1, 1], [], []>} : vector<8x32xbf16>, vector<32x64xbf16>, vector<8x64xf32> -> vector<8x64xf32>
    %c0_114 = arith.constant 0 : index
    %c0_115 = arith.constant 0 : index
    %c0_116 = arith.constant 0 : index
    %152 = vector.load %arg12[%c0_114, %c0_115, %c0_116] : memref<2x1x64xf32, #tpu.memory_space<vmem>>, vector<1x1x64xf32>
    %153 = vector.shape_cast %152 : vector<1x1x64xf32> to vector<1x64xf32>
    %154 = vector.broadcast %153 : vector<1x64xf32> to vector<8x64xf32>
    %155 = arith.addf %151, %154 : vector<8x64xf32>
    %156 = arith.mulf %155, %155 : vector<8x64xf32>
    %157 = arith.mulf %155, %156 : vector<8x64xf32>
    %cst_117 = arith.constant 4.471500e-02 : f32
    %158 = vector.broadcast %cst_117 : f32 to vector<8x64xf32>
    %159 = arith.mulf %158, %157 : vector<8x64xf32>
    %160 = arith.addf %155, %159 : vector<8x64xf32>
    %cst_118 = arith.constant 0.797884583 : f32
    %161 = vector.broadcast %cst_118 : f32 to vector<8x64xf32>
    %162 = arith.mulf %161, %160 : vector<8x64xf32>
    %163 = math.tanh %162 : vector<8x64xf32>
    %cst_119 = arith.constant 1.000000e+00 : f32
    %164 = vector.broadcast %cst_119 : f32 to vector<8x64xf32>
    %165 = arith.addf %164, %163 : vector<8x64xf32>
    %cst_120 = arith.constant 5.000000e-01 : f32
    %166 = vector.broadcast %cst_120 : f32 to vector<8x64xf32>
    %167 = arith.mulf %166, %165 : vector<8x64xf32>
    %168 = arith.mulf %155, %167 : vector<8x64xf32>
    %169 = arith.truncf %168 : vector<8x64xf32> to vector<8x64xbf16>
    %c0_121 = arith.constant 0 : index
    %c0_122 = arith.constant 0 : index
    %c0_123 = arith.constant 0 : index
    %170 = vector.load %arg13[%c0_121, %c0_122, %c0_123] : memref<2x64x32xbf16, #tpu.memory_space<vmem>>, vector<1x64x32xbf16>
    %171 = vector.shape_cast %170 : vector<1x64x32xbf16> to vector<64x32xbf16>
    %cst_124 = arith.constant dense<0.000000e+00> : vector<8x32xf32>
    %172 = tpu.matmul %169, %171, %cst_124 {dimension_numbers = #tpu.dot_dimension_numbers<[1], [0], [0], [1], [0, 0, 1, 1], [], []>} : vector<8x64xbf16>, vector<64x32xbf16>, vector<8x32xf32> -> vector<8x32xf32>
    %c0_125 = arith.constant 0 : index
    %c0_126 = arith.constant 0 : index
    %c0_127 = arith.constant 0 : index
    %173 = vector.load %arg14[%c0_125, %c0_126, %c0_127] : memref<2x1x32xf32, #tpu.memory_space<vmem>>, vector<1x1x32xf32>
    %174 = vector.shape_cast %173 : vector<1x1x32xf32> to vector<1x32xf32>
    %175 = vector.broadcast %174 : vector<1x32xf32> to vector<8x32xf32>
    %176 = arith.addf %172, %175 : vector<8x32xf32>
    %177 = arith.addf %147, %176 : vector<8x32xf32>
    %c0_128 = arith.constant 0 : index
    %c0_129 = arith.constant 0 : index
    %c0_130 = arith.constant 0 : index
    %178 = vector.load %arg15[%c0_128, %c0_129, %c0_130] : memref<2x1x32xf32, #tpu.memory_space<vmem>>, vector<1x1x32xf32>
    %179 = vector.shape_cast %178 : vector<1x1x32xf32> to vector<1x32xf32>
    %c0_131 = arith.constant 0 : index
    %c0_132 = arith.constant 0 : index
    %c0_133 = arith.constant 0 : index
    %180 = vector.load %arg16[%c0_131, %c0_132, %c0_133] : memref<2x1x32xf32, #tpu.memory_space<vmem>>, vector<1x1x32xf32>
    %181 = vector.shape_cast %180 : vector<1x1x32xf32> to vector<1x32xf32>
    %cst_134 = arith.constant dense<0.000000e+00> : vector<8xf32>
    %182 = vector.multi_reduction <add>, %177, %cst_134 [1] : vector<8x32xf32> to vector<8xf32>
    %183 = vector.shape_cast %182 : vector<8xf32> to vector<8x1xf32>
    %cst_135 = arith.constant 3.200000e+01 : f32
    %184 = vector.broadcast %cst_135 : f32 to vector<8x1xf32>
    %185 = arith.divf %183, %184 : vector<8x1xf32>
    %186 = vector.broadcast %185 : vector<8x1xf32> to vector<8x32xf32>
    %187 = arith.subf %177, %186 : vector<8x32xf32>
    %188 = arith.mulf %187, %187 : vector<8x32xf32>
    %cst_136 = arith.constant dense<0.000000e+00> : vector<8xf32>
    %189 = vector.multi_reduction <add>, %188, %cst_136 [1] : vector<8x32xf32> to vector<8xf32>
    %190 = vector.shape_cast %189 : vector<8xf32> to vector<8x1xf32>
    %cst_137 = arith.constant 3.200000e+01 : f32
    %191 = vector.broadcast %cst_137 : f32 to vector<8x1xf32>
    %192 = arith.divf %190, %191 : vector<8x1xf32>
    %193 = vector.broadcast %185 : vector<8x1xf32> to vector<8x32xf32>
    %194 = arith.subf %177, %193 : vector<8x32xf32>
    %cst_138 = arith.constant 9.99999996E-13 : f32
    %195 = vector.broadcast %cst_138 : f32 to vector<8x1xf32>
    %196 = arith.addf %192, %195 : vector<8x1xf32>
    %197 = math.rsqrt %196 : vector<8x1xf32>
    %198 = vector.broadcast %197 : vector<8x1xf32> to vector<8x32xf32>
    %199 = arith.mulf %194, %198 : vector<8x32xf32>
    %200 = vector.broadcast %179 : vector<1x32xf32> to vector<8x32xf32>
    %201 = arith.mulf %199, %200 : vector<8x32xf32>
    %202 = vector.broadcast %181 : vector<1x32xf32> to vector<8x32xf32>
    %203 = arith.addf %201, %202 : vector<8x32xf32>
    %204 = vector.extract_strided_slice %203 {offsets = [0, 0], sizes = [1, 32], strides = [1, 1]} : vector<8x32xf32> to vector<1x32xf32>
    %205 = vector.extract_strided_slice %1 {offsets = [0, 0], sizes = [1, 8], strides = [1, 1]} : vector<8x8xf32> to vector<1x8xf32>
    %206 = arith.truncf %203 : vector<8x32xf32> to vector<8x32xbf16>
    %207 = arith.truncf %204 : vector<1x32xf32> to vector<1x32xbf16>
    %cst_139 = arith.constant 0.000000e+00 : f32
    %208 = vector.broadcast %cst_139 : f32 to vector<1x32xf32>
    %c1_140 = arith.constant 1 : index
    %c0_141 = arith.constant 0 : index
    %c0_142 = arith.constant 0 : index
    %c0_143 = arith.constant 0 : index
    %c0_144 = arith.constant 0 : index
    %209 = vector.load %arg5[%c1_140, %c0_141, %c0_142, %c0_143, %c0_144] : memref<2x3x2x32x16xbf16, #tpu.memory_space<vmem>>, vector<1x1x1x32x16xbf16>
    %210 = vector.shape_cast %209 : vector<1x1x1x32x16xbf16> to vector<32x16xbf16>
    %cst_145 = arith.constant dense<0.000000e+00> : vector<1x16xf32>
    %211 = tpu.matmul %207, %210, %cst_145 {dimension_numbers = #tpu.dot_dimension_numbers<[1], [0], [0], [1], [0, 0, 1, 1], [], []>} : vector<1x32xbf16>, vector<32x16xbf16>, vector<1x16xf32> -> vector<1x16xf32>
    %c1_146 = arith.constant 1 : index
    %c0_147 = arith.constant 0 : index
    %c0_148 = arith.constant 0 : index
    %c0_149 = arith.constant 0 : index
    %c0_150 = arith.constant 0 : index
    %212 = vector.load %arg6[%c1_146, %c0_147, %c0_148, %c0_149, %c0_150] : memref<2x3x2x1x16xf32, #tpu.memory_space<vmem>>, vector<1x1x1x1x16xf32>
    %213 = vector.shape_cast %212 : vector<1x1x1x1x16xf32> to vector<1x16xf32>
    %214 = arith.addf %211, %213 : vector<1x16xf32>
    %c1_151 = arith.constant 1 : index
    %c1_152 = arith.constant 1 : index
    %c0_153 = arith.constant 0 : index
    %c0_154 = arith.constant 0 : index
    %c0_155 = arith.constant 0 : index
    %215 = vector.load %arg5[%c1_151, %c1_152, %c0_153, %c0_154, %c0_155] : memref<2x3x2x32x16xbf16, #tpu.memory_space<vmem>>, vector<1x1x1x32x16xbf16>
    %216 = vector.shape_cast %215 : vector<1x1x1x32x16xbf16> to vector<32x16xbf16>
    %cst_156 = arith.constant dense<0.000000e+00> : vector<8x16xf32>
    %217 = tpu.matmul %206, %216, %cst_156 {dimension_numbers = #tpu.dot_dimension_numbers<[1], [0], [0], [1], [0, 0, 1, 1], [], []>} : vector<8x32xbf16>, vector<32x16xbf16>, vector<8x16xf32> -> vector<8x16xf32>
    %c1_157 = arith.constant 1 : index
    %c1_158 = arith.constant 1 : index
    %c0_159 = arith.constant 0 : index
    %c0_160 = arith.constant 0 : index
    %c0_161 = arith.constant 0 : index
    %218 = vector.load %arg6[%c1_157, %c1_158, %c0_159, %c0_160, %c0_161] : memref<2x3x2x1x16xf32, #tpu.memory_space<vmem>>, vector<1x1x1x1x16xf32>
    %219 = vector.shape_cast %218 : vector<1x1x1x1x16xf32> to vector<1x16xf32>
    %220 = vector.broadcast %219 : vector<1x16xf32> to vector<8x16xf32>
    %221 = arith.addf %217, %220 : vector<8x16xf32>
    %c1_162 = arith.constant 1 : index
    %c2_163 = arith.constant 2 : index
    %c0_164 = arith.constant 0 : index
    %c0_165 = arith.constant 0 : index
    %c0_166 = arith.constant 0 : index
    %222 = vector.load %arg5[%c1_162, %c2_163, %c0_164, %c0_165, %c0_166] : memref<2x3x2x32x16xbf16, #tpu.memory_space<vmem>>, vector<1x1x1x32x16xbf16>
    %223 = vector.shape_cast %222 : vector<1x1x1x32x16xbf16> to vector<32x16xbf16>
    %cst_167 = arith.constant dense<0.000000e+00> : vector<8x16xf32>
    %224 = tpu.matmul %206, %223, %cst_167 {dimension_numbers = #tpu.dot_dimension_numbers<[1], [0], [0], [1], [0, 0, 1, 1], [], []>} : vector<8x32xbf16>, vector<32x16xbf16>, vector<8x16xf32> -> vector<8x16xf32>
    %c1_168 = arith.constant 1 : index
    %c2_169 = arith.constant 2 : index
    %c0_170 = arith.constant 0 : index
    %c0_171 = arith.constant 0 : index
    %c0_172 = arith.constant 0 : index
    %225 = vector.load %arg6[%c1_168, %c2_169, %c0_170, %c0_171, %c0_172] : memref<2x3x2x1x16xf32, #tpu.memory_space<vmem>>, vector<1x1x1x1x16xf32>
    %226 = vector.shape_cast %225 : vector<1x1x1x1x16xf32> to vector<1x16xf32>
    %227 = vector.broadcast %226 : vector<1x16xf32> to vector<8x16xf32>
    %228 = arith.addf %224, %227 : vector<8x16xf32>
    %229 = arith.truncf %214 : vector<1x16xf32> to vector<1x16xbf16>
    %230 = arith.truncf %221 : vector<8x16xf32> to vector<8x16xbf16>
    %cst_173 = arith.constant dense<0.000000e+00> : vector<1x8xf32>
    %231 = tpu.matmul %229, %230, %cst_173 {dimension_numbers = #tpu.dot_dimension_numbers<[1], [1], [0], [0], [0, 0, 1, 0], [], []>} : vector<1x16xbf16>, vector<8x16xbf16>, vector<1x8xf32> -> vector<1x8xf32>
    %232 = arith.addf %231, %205 : vector<1x8xf32>
    %cst_174 = arith.constant dense<0xFF800000> : vector<1xf32>
    %233 = vector.multi_reduction <maximumf>, %232, %cst_174 [1] : vector<1x8xf32> to vector<1xf32>
    %234 = vector.shape_cast %233 : vector<1xf32> to vector<1x1xf32>
    %235 = vector.broadcast %234 : vector<1x1xf32> to vector<1x8xf32>
    %236 = arith.subf %232, %235 : vector<1x8xf32>
    %237 = math.exp %236 : vector<1x8xf32>
    %cst_175 = arith.constant dense<0.000000e+00> : vector<1xf32>
    %238 = vector.multi_reduction <add>, %237, %cst_175 [1] : vector<1x8xf32> to vector<1xf32>
    %239 = vector.shape_cast %238 : vector<1xf32> to vector<1x1xf32>
    %240 = tpu.reciprocal %239 {approx = true} : vector<1x1xf32> -> vector<1x1xf32>
    %241 = vector.broadcast %240 : vector<1x1xf32> to vector<1x8xf32>
    %242 = arith.mulf %237, %241 : vector<1x8xf32>
    %243 = arith.truncf %242 : vector<1x8xf32> to vector<1x8xbf16>
    %244 = arith.truncf %228 : vector<8x16xf32> to vector<8x16xbf16>
    %cst_176 = arith.constant dense<0.000000e+00> : vector<1x16xf32>
    %245 = tpu.matmul %243, %244, %cst_176 {dimension_numbers = #tpu.dot_dimension_numbers<[1], [0], [0], [1], [0, 0, 1, 1], [], []>} : vector<1x8xbf16>, vector<8x16xbf16>, vector<1x16xf32> -> vector<1x16xf32>
    %246 = arith.truncf %245 : vector<1x16xf32> to vector<1x16xbf16>
    %c1_177 = arith.constant 1 : index
    %c0_178 = arith.constant 0 : index
    %c0_179 = arith.constant 0 : index
    %c0_180 = arith.constant 0 : index
    %247 = vector.load %arg7[%c1_177, %c0_178, %c0_179, %c0_180] : memref<2x2x16x32xbf16, #tpu.memory_space<vmem>>, vector<1x1x16x32xbf16>
    %248 = vector.shape_cast %247 : vector<1x1x16x32xbf16> to vector<16x32xbf16>
    %cst_181 = arith.constant dense<0.000000e+00> : vector<1x32xf32>
    %249 = tpu.matmul %246, %248, %cst_181 {dimension_numbers = #tpu.dot_dimension_numbers<[1], [0], [0], [1], [0, 0, 1, 1], [], []>} : vector<1x16xbf16>, vector<16x32xbf16>, vector<1x32xf32> -> vector<1x32xf32>
    %250 = arith.addf %208, %249 : vector<1x32xf32>
    %c1_182 = arith.constant 1 : index
    %c0_183 = arith.constant 0 : index
    %c1_184 = arith.constant 1 : index
    %c0_185 = arith.constant 0 : index
    %c0_186 = arith.constant 0 : index
    %251 = vector.load %arg5[%c1_182, %c0_183, %c1_184, %c0_185, %c0_186] : memref<2x3x2x32x16xbf16, #tpu.memory_space<vmem>>, vector<1x1x1x32x16xbf16>
    %252 = vector.shape_cast %251 : vector<1x1x1x32x16xbf16> to vector<32x16xbf16>
    %cst_187 = arith.constant dense<0.000000e+00> : vector<1x16xf32>
    %253 = tpu.matmul %207, %252, %cst_187 {dimension_numbers = #tpu.dot_dimension_numbers<[1], [0], [0], [1], [0, 0, 1, 1], [], []>} : vector<1x32xbf16>, vector<32x16xbf16>, vector<1x16xf32> -> vector<1x16xf32>
    %c1_188 = arith.constant 1 : index
    %c0_189 = arith.constant 0 : index
    %c1_190 = arith.constant 1 : index
    %c0_191 = arith.constant 0 : index
    %c0_192 = arith.constant 0 : index
    %254 = vector.load %arg6[%c1_188, %c0_189, %c1_190, %c0_191, %c0_192] : memref<2x3x2x1x16xf32, #tpu.memory_space<vmem>>, vector<1x1x1x1x16xf32>
    %255 = vector.shape_cast %254 : vector<1x1x1x1x16xf32> to vector<1x16xf32>
    %256 = arith.addf %253, %255 : vector<1x16xf32>
    %c1_193 = arith.constant 1 : index
    %c1_194 = arith.constant 1 : index
    %c1_195 = arith.constant 1 : index
    %c0_196 = arith.constant 0 : index
    %c0_197 = arith.constant 0 : index
    %257 = vector.load %arg5[%c1_193, %c1_194, %c1_195, %c0_196, %c0_197] : memref<2x3x2x32x16xbf16, #tpu.memory_space<vmem>>, vector<1x1x1x32x16xbf16>
    %258 = vector.shape_cast %257 : vector<1x1x1x32x16xbf16> to vector<32x16xbf16>
    %cst_198 = arith.constant dense<0.000000e+00> : vector<8x16xf32>
    %259 = tpu.matmul %206, %258, %cst_198 {dimension_numbers = #tpu.dot_dimension_numbers<[1], [0], [0], [1], [0, 0, 1, 1], [], []>} : vector<8x32xbf16>, vector<32x16xbf16>, vector<8x16xf32> -> vector<8x16xf32>
    %c1_199 = arith.constant 1 : index
    %c1_200 = arith.constant 1 : index
    %c1_201 = arith.constant 1 : index
    %c0_202 = arith.constant 0 : index
    %c0_203 = arith.constant 0 : index
    %260 = vector.load %arg6[%c1_199, %c1_200, %c1_201, %c0_202, %c0_203] : memref<2x3x2x1x16xf32, #tpu.memory_space<vmem>>, vector<1x1x1x1x16xf32>
    %261 = vector.shape_cast %260 : vector<1x1x1x1x16xf32> to vector<1x16xf32>
    %262 = vector.broadcast %261 : vector<1x16xf32> to vector<8x16xf32>
    %263 = arith.addf %259, %262 : vector<8x16xf32>
    %c1_204 = arith.constant 1 : index
    %c2_205 = arith.constant 2 : index
    %c1_206 = arith.constant 1 : index
    %c0_207 = arith.constant 0 : index
    %c0_208 = arith.constant 0 : index
    %264 = vector.load %arg5[%c1_204, %c2_205, %c1_206, %c0_207, %c0_208] : memref<2x3x2x32x16xbf16, #tpu.memory_space<vmem>>, vector<1x1x1x32x16xbf16>
    %265 = vector.shape_cast %264 : vector<1x1x1x32x16xbf16> to vector<32x16xbf16>
    %cst_209 = arith.constant dense<0.000000e+00> : vector<8x16xf32>
    %266 = tpu.matmul %206, %265, %cst_209 {dimension_numbers = #tpu.dot_dimension_numbers<[1], [0], [0], [1], [0, 0, 1, 1], [], []>} : vector<8x32xbf16>, vector<32x16xbf16>, vector<8x16xf32> -> vector<8x16xf32>
    %c1_210 = arith.constant 1 : index
    %c2_211 = arith.constant 2 : index
    %c1_212 = arith.constant 1 : index
    %c0_213 = arith.constant 0 : index
    %c0_214 = arith.constant 0 : index
    %267 = vector.load %arg6[%c1_210, %c2_211, %c1_212, %c0_213, %c0_214] : memref<2x3x2x1x16xf32, #tpu.memory_space<vmem>>, vector<1x1x1x1x16xf32>
    %268 = vector.shape_cast %267 : vector<1x1x1x1x16xf32> to vector<1x16xf32>
    %269 = vector.broadcast %268 : vector<1x16xf32> to vector<8x16xf32>
    %270 = arith.addf %266, %269 : vector<8x16xf32>
    %271 = arith.truncf %256 : vector<1x16xf32> to vector<1x16xbf16>
    %272 = arith.truncf %263 : vector<8x16xf32> to vector<8x16xbf16>
    %cst_215 = arith.constant dense<0.000000e+00> : vector<1x8xf32>
    %273 = tpu.matmul %271, %272, %cst_215 {dimension_numbers = #tpu.dot_dimension_numbers<[1], [1], [0], [0], [0, 0, 1, 0], [], []>} : vector<1x16xbf16>, vector<8x16xbf16>, vector<1x8xf32> -> vector<1x8xf32>
    %274 = arith.addf %273, %205 : vector<1x8xf32>
    %cst_216 = arith.constant dense<0xFF800000> : vector<1xf32>
    %275 = vector.multi_reduction <maximumf>, %274, %cst_216 [1] : vector<1x8xf32> to vector<1xf32>
    %276 = vector.shape_cast %275 : vector<1xf32> to vector<1x1xf32>
    %277 = vector.broadcast %276 : vector<1x1xf32> to vector<1x8xf32>
    %278 = arith.subf %274, %277 : vector<1x8xf32>
    %279 = math.exp %278 : vector<1x8xf32>
    %cst_217 = arith.constant dense<0.000000e+00> : vector<1xf32>
    %280 = vector.multi_reduction <add>, %279, %cst_217 [1] : vector<1x8xf32> to vector<1xf32>
    %281 = vector.shape_cast %280 : vector<1xf32> to vector<1x1xf32>
    %282 = tpu.reciprocal %281 {approx = true} : vector<1x1xf32> -> vector<1x1xf32>
    %283 = vector.broadcast %282 : vector<1x1xf32> to vector<1x8xf32>
    %284 = arith.mulf %279, %283 : vector<1x8xf32>
    %285 = arith.truncf %284 : vector<1x8xf32> to vector<1x8xbf16>
    %286 = arith.truncf %270 : vector<8x16xf32> to vector<8x16xbf16>
    %cst_218 = arith.constant dense<0.000000e+00> : vector<1x16xf32>
    %287 = tpu.matmul %285, %286, %cst_218 {dimension_numbers = #tpu.dot_dimension_numbers<[1], [0], [0], [1], [0, 0, 1, 1], [], []>} : vector<1x8xbf16>, vector<8x16xbf16>, vector<1x16xf32> -> vector<1x16xf32>
    %288 = arith.truncf %287 : vector<1x16xf32> to vector<1x16xbf16>
    %c1_219 = arith.constant 1 : index
    %c1_220 = arith.constant 1 : index
    %c0_221 = arith.constant 0 : index
    %c0_222 = arith.constant 0 : index
    %289 = vector.load %arg7[%c1_219, %c1_220, %c0_221, %c0_222] : memref<2x2x16x32xbf16, #tpu.memory_space<vmem>>, vector<1x1x16x32xbf16>
    %290 = vector.shape_cast %289 : vector<1x1x16x32xbf16> to vector<16x32xbf16>
    %cst_223 = arith.constant dense<0.000000e+00> : vector<1x32xf32>
    %291 = tpu.matmul %288, %290, %cst_223 {dimension_numbers = #tpu.dot_dimension_numbers<[1], [0], [0], [1], [0, 0, 1, 1], [], []>} : vector<1x16xbf16>, vector<16x32xbf16>, vector<1x32xf32> -> vector<1x32xf32>
    %292 = arith.addf %250, %291 : vector<1x32xf32>
    %c1_224 = arith.constant 1 : index
    %c0_225 = arith.constant 0 : index
    %c0_226 = arith.constant 0 : index
    %293 = vector.load %arg8[%c1_224, %c0_225, %c0_226] : memref<2x1x32xf32, #tpu.memory_space<vmem>>, vector<1x1x32xf32>
    %294 = vector.shape_cast %293 : vector<1x1x32xf32> to vector<1x32xf32>
    %295 = arith.addf %292, %294 : vector<1x32xf32>
    %296 = arith.addf %204, %295 : vector<1x32xf32>
    %c1_227 = arith.constant 1 : index
    %c0_228 = arith.constant 0 : index
    %c0_229 = arith.constant 0 : index
    %297 = vector.load %arg9[%c1_227, %c0_228, %c0_229] : memref<2x1x32xf32, #tpu.memory_space<vmem>>, vector<1x1x32xf32>
    %298 = vector.shape_cast %297 : vector<1x1x32xf32> to vector<1x32xf32>
    %c1_230 = arith.constant 1 : index
    %c0_231 = arith.constant 0 : index
    %c0_232 = arith.constant 0 : index
    %299 = vector.load %arg10[%c1_230, %c0_231, %c0_232] : memref<2x1x32xf32, #tpu.memory_space<vmem>>, vector<1x1x32xf32>
    %300 = vector.shape_cast %299 : vector<1x1x32xf32> to vector<1x32xf32>
    %cst_233 = arith.constant dense<0.000000e+00> : vector<1xf32>
    %301 = vector.multi_reduction <add>, %296, %cst_233 [1] : vector<1x32xf32> to vector<1xf32>
    %302 = vector.shape_cast %301 : vector<1xf32> to vector<1x1xf32>
    %cst_234 = arith.constant 3.200000e+01 : f32
    %303 = vector.broadcast %cst_234 : f32 to vector<1x1xf32>
    %304 = arith.divf %302, %303 : vector<1x1xf32>
    %305 = vector.broadcast %304 : vector<1x1xf32> to vector<1x32xf32>
    %306 = arith.subf %296, %305 : vector<1x32xf32>
    %307 = arith.mulf %306, %306 : vector<1x32xf32>
    %cst_235 = arith.constant dense<0.000000e+00> : vector<1xf32>
    %308 = vector.multi_reduction <add>, %307, %cst_235 [1] : vector<1x32xf32> to vector<1xf32>
    %309 = vector.shape_cast %308 : vector<1xf32> to vector<1x1xf32>
    %cst_236 = arith.constant 3.200000e+01 : f32
    %310 = vector.broadcast %cst_236 : f32 to vector<1x1xf32>
    %311 = arith.divf %309, %310 : vector<1x1xf32>
    %312 = vector.broadcast %304 : vector<1x1xf32> to vector<1x32xf32>
    %313 = arith.subf %296, %312 : vector<1x32xf32>
    %cst_237 = arith.constant 9.99999996E-13 : f32
    %314 = vector.broadcast %cst_237 : f32 to vector<1x1xf32>
    %315 = arith.addf %311, %314 : vector<1x1xf32>
    %316 = math.rsqrt %315 : vector<1x1xf32>
    %317 = vector.broadcast %316 : vector<1x1xf32> to vector<1x32xf32>
    %318 = arith.mulf %313, %317 : vector<1x32xf32>
    %319 = arith.mulf %318, %298 : vector<1x32xf32>
    %320 = arith.addf %319, %300 : vector<1x32xf32>
    %321 = arith.truncf %320 : vector<1x32xf32> to vector<1x32xbf16>
    %c1_238 = arith.constant 1 : index
    %c0_239 = arith.constant 0 : index
    %c0_240 = arith.constant 0 : index
    %322 = vector.load %arg11[%c1_238, %c0_239, %c0_240] : memref<2x32x64xbf16, #tpu.memory_space<vmem>>, vector<1x32x64xbf16>
    %323 = vector.shape_cast %322 : vector<1x32x64xbf16> to vector<32x64xbf16>
    %cst_241 = arith.constant dense<0.000000e+00> : vector<1x64xf32>
    %324 = tpu.matmul %321, %323, %cst_241 {dimension_numbers = #tpu.dot_dimension_numbers<[1], [0], [0], [1], [0, 0, 1, 1], [], []>} : vector<1x32xbf16>, vector<32x64xbf16>, vector<1x64xf32> -> vector<1x64xf32>
    %c1_242 = arith.constant 1 : index
    %c0_243 = arith.constant 0 : index
    %c0_244 = arith.constant 0 : index
    %325 = vector.load %arg12[%c1_242, %c0_243, %c0_244] : memref<2x1x64xf32, #tpu.memory_space<vmem>>, vector<1x1x64xf32>
    %326 = vector.shape_cast %325 : vector<1x1x64xf32> to vector<1x64xf32>
    %327 = arith.addf %324, %326 : vector<1x64xf32>
    %328 = arith.mulf %327, %327 : vector<1x64xf32>
    %329 = arith.mulf %327, %328 : vector<1x64xf32>
    %cst_245 = arith.constant 4.471500e-02 : f32
    %330 = vector.broadcast %cst_245 : f32 to vector<1x64xf32>
    %331 = arith.mulf %330, %329 : vector<1x64xf32>
    %332 = arith.addf %327, %331 : vector<1x64xf32>
    %cst_246 = arith.constant 0.797884583 : f32
    %333 = vector.broadcast %cst_246 : f32 to vector<1x64xf32>
    %334 = arith.mulf %333, %332 : vector<1x64xf32>
    %335 = math.tanh %334 : vector<1x64xf32>
    %cst_247 = arith.constant 1.000000e+00 : f32
    %336 = vector.broadcast %cst_247 : f32 to vector<1x64xf32>
    %337 = arith.addf %336, %335 : vector<1x64xf32>
    %cst_248 = arith.constant 5.000000e-01 : f32
    %338 = vector.broadcast %cst_248 : f32 to vector<1x64xf32>
    %339 = arith.mulf %338, %337 : vector<1x64xf32>
    %340 = arith.mulf %327, %339 : vector<1x64xf32>
    %341 = arith.truncf %340 : vector<1x64xf32> to vector<1x64xbf16>
    %c1_249 = arith.constant 1 : index
    %c0_250 = arith.constant 0 : index
    %c0_251 = arith.constant 0 : index
    %342 = vector.load %arg13[%c1_249, %c0_250, %c0_251] : memref<2x64x32xbf16, #tpu.memory_space<vmem>>, vector<1x64x32xbf16>
    %343 = vector.shape_cast %342 : vector<1x64x32xbf16> to vector<64x32xbf16>
    %cst_252 = arith.constant dense<0.000000e+00> : vector<1x32xf32>
    %344 = tpu.matmul %341, %343, %cst_252 {dimension_numbers = #tpu.dot_dimension_numbers<[1], [0], [0], [1], [0, 0, 1, 1], [], []>} : vector<1x64xbf16>, vector<64x32xbf16>, vector<1x32xf32> -> vector<1x32xf32>
    %c1_253 = arith.constant 1 : index
    %c0_254 = arith.constant 0 : index
    %c0_255 = arith.constant 0 : index
    %345 = vector.load %arg14[%c1_253, %c0_254, %c0_255] : memref<2x1x32xf32, #tpu.memory_space<vmem>>, vector<1x1x32xf32>
    %346 = vector.shape_cast %345 : vector<1x1x32xf32> to vector<1x32xf32>
    %347 = arith.addf %344, %346 : vector<1x32xf32>
    %348 = arith.addf %320, %347 : vector<1x32xf32>
    %c1_256 = arith.constant 1 : index
    %c0_257 = arith.constant 0 : index
    %c0_258 = arith.constant 0 : index
    %349 = vector.load %arg15[%c1_256, %c0_257, %c0_258] : memref<2x1x32xf32, #tpu.memory_space<vmem>>, vector<1x1x32xf32>
    %350 = vector.shape_cast %349 : vector<1x1x32xf32> to vector<1x32xf32>
    %c1_259 = arith.constant 1 : index
    %c0_260 = arith.constant 0 : index
    %c0_261 = arith.constant 0 : index
    %351 = vector.load %arg16[%c1_259, %c0_260, %c0_261] : memref<2x1x32xf32, #tpu.memory_space<vmem>>, vector<1x1x32xf32>
    %352 = vector.shape_cast %351 : vector<1x1x32xf32> to vector<1x32xf32>
    %cst_262 = arith.constant dense<0.000000e+00> : vector<1xf32>
    %353 = vector.multi_reduction <add>, %348, %cst_262 [1] : vector<1x32xf32> to vector<1xf32>
    %354 = vector.shape_cast %353 : vector<1xf32> to vector<1x1xf32>
    %cst_263 = arith.constant 3.200000e+01 : f32
    %355 = vector.broadcast %cst_263 : f32 to vector<1x1xf32>
    %356 = arith.divf %354, %355 : vector<1x1xf32>
    %357 = vector.broadcast %356 : vector<1x1xf32> to vector<1x32xf32>
    %358 = arith.subf %348, %357 : vector<1x32xf32>
    %359 = arith.mulf %358, %358 : vector<1x32xf32>
    %cst_264 = arith.constant dense<0.000000e+00> : vector<1xf32>
    %360 = vector.multi_reduction <add>, %359, %cst_264 [1] : vector<1x32xf32> to vector<1xf32>
    %361 = vector.shape_cast %360 : vector<1xf32> to vector<1x1xf32>
    %cst_265 = arith.constant 3.200000e+01 : f32
    %362 = vector.broadcast %cst_265 : f32 to vector<1x1xf32>
    %363 = arith.divf %361, %362 : vector<1x1xf32>
    %364 = vector.broadcast %356 : vector<1x1xf32> to vector<1x32xf32>
    %365 = arith.subf %348, %364 : vector<1x32xf32>
    %cst_266 = arith.constant 9.99999996E-13 : f32
    %366 = vector.broadcast %cst_266 : f32 to vector<1x1xf32>
    %367 = arith.addf %363, %366 : vector<1x1xf32>
    %368 = math.rsqrt %367 : vector<1x1xf32>
    %369 = vector.broadcast %368 : vector<1x1xf32> to vector<1x32xf32>
    %370 = arith.mulf %365, %369 : vector<1x32xf32>
    %371 = arith.mulf %370, %350 : vector<1x32xf32>
    %372 = arith.addf %371, %352 : vector<1x32xf32>
    %c0_267 = arith.constant 0 : index
    %c0_268 = arith.constant 0 : index
    %c0_269 = arith.constant 0 : index
    %373 = vector.load %arg17[%c0_267, %c0_268, %c0_269] : memref<1x1x32xf32, #tpu.memory_space<vmem>>, vector<1x1x32xf32>
    %374 = vector.shape_cast %373 : vector<1x1x32xf32> to vector<1x32xf32>
    %375 = vector.shape_cast %372 : vector<1x32xf32> to vector<1x1x32xf32>
    tpu.vector_store %arg17[%c0_267, %c0_268, %c0_269], %375 {strides = array<i32>} : memref<1x1x32xf32, #tpu.memory_space<vmem>>, vector<1x1x32xf32>,
    return
  }
  func.func @transform_0(%arg0: i32) -> (i32, i32, i32) {
    %c0_i32 = arith.constant 0 : i32
    %c0_i32_0 = arith.constant 0 : i32
    %c0_i32_1 = arith.constant 0 : i32
    return %arg0, %c0_i32, %c0_i32_0 : i32, i32, i32
  }
  func.func @transform_1(%arg0: i32) -> (i32, i32, i32) {
    %c0_i32 = arith.constant 0 : i32
    %c0_i32_0 = arith.constant 0 : i32
    %c0_i32_1 = arith.constant 0 : i32
    return %arg0, %c0_i32, %c0_i32_0 : i32, i32, i32
  }
  func.func @transform_2(%arg0: i32) -> (i32, i32) {
    %c0_i32 = arith.constant 0 : i32
    %c0_i32_0 = arith.constant 0 : i32
    %c0_i32_1 = arith.constant 0 : i32
    return %c0_i32, %c0_i32_0 : i32, i32
  }
  func.func @transform_3(%arg0: i32) -> (i32, i32) {
    %c0_i32 = arith.constant 0 : i32
    %c0_i32_0 = arith.constant 0 : i32
    %c0_i32_1 = arith.constant 0 : i32
    return %c0_i32, %c0_i32_0 : i32, i32
  }
  func.func @transform_4(%arg0: i32) -> (i32, i32, i32, i32, i32) {
    %c0_i32 = arith.constant 0 : i32
    %c0_i32_0 = arith.constant 0 : i32
    %c0_i32_1 = arith.constant 0 : i32
    %c0_i32_2 = arith.constant 0 : i32
    %c0_i32_3 = arith.constant 0 : i32
    %c0_i32_4 = arith.constant 0 : i32
    return %c0_i32, %c0_i32_0, %c0_i32_1, %c0_i32_2, %c0_i32_3 : i32, i32, i32, i32, i32
  }
  func.func @transform_5(%arg0: i32) -> (i32, i32, i32, i32, i32) {
    %c0_i32 = arith.constant 0 : i32
    %c0_i32_0 = arith.constant 0 : i32
    %c0_i32_1 = arith.constant 0 : i32
    %c0_i32_2 = arith.constant 0 : i32
    %c0_i32_3 = arith.constant 0 : i32
    %c0_i32_4 = arith.constant 0 : i32
    return %c0_i32, %c0_i32_0, %c0_i32_1, %c0_i32_2, %c0_i32_3 : i32, i32, i32, i32, i32
  }
  func.func @transform_6(%arg0: i32) -> (i32, i32, i32, i32) {
    %c0_i32 = arith.constant 0 : i32
    %c0_i32_0 = arith.constant 0 : i32
    %c0_i32_1 = arith.constant 0 : i32
    %c0_i32_2 = arith.constant 0 : i32
    %c0_i32_3 = arith.constant 0 : i32
    return %c0_i32, %c0_i32_0, %c0_i32_1, %c0_i32_2 : i32, i32, i32, i32
  }
  func.func @transform_7(%arg0: i32) -> (i32, i32, i32) {
    %c0_i32 = arith.constant 0 : i32
    %c0_i32_0 = arith.constant 0 : i32
    %c0_i32_1 = arith.constant 0 : i32
    %c0_i32_2 = arith.constant 0 : i32
    return %c0_i32, %c0_i32_0, %c0_i32_1 : i32, i32, i32
  }
  func.func @transform_8(%arg0: i32) -> (i32, i32, i32) {
    %c0_i32 = arith.constant 0 : i32
    %c0_i32_0 = arith.constant 0 : i32
    %c0_i32_1 = arith.constant 0 : i32
    %c0_i32_2 = arith.constant 0 : i32
    return %c0_i32, %c0_i32_0, %c0_i32_1 : i32, i32, i32
  }
  func.func @transform_9(%arg0: i32) -> (i32, i32, i32) {
    %c0_i32 = arith.constant 0 : i32
    %c0_i32_0 = arith.constant 0 : i32
    %c0_i32_1 = arith.constant 0 : i32
    %c0_i32_2 = arith.constant 0 : i32
    return %c0_i32, %c0_i32_0, %c0_i32_1 : i32, i32, i32
  }
  func.func @transform_10(%arg0: i32) -> (i32, i32, i32) {
    %c0_i32 = arith.constant 0 : i32
    %c0_i32_0 = arith.constant 0 : i32
    %c0_i32_1 = arith.constant 0 : i32
    %c0_i32_2 = arith.constant 0 : i32
    return %c0_i32, %c0_i32_0, %c0_i32_1 : i32, i32, i32
  }
  func.func @transform_11(%arg0: i32) -> (i32, i32, i32) {
    %c0_i32 = arith.constant 0 : i32
    %c0_i32_0 = arith.constant 0 : i32
    %c0_i32_1 = arith.constant 0 : i32
    %c0_i32_2 = arith.constant 0 : i32
    return %c0_i32, %c0_i32_0, %c0_i32_1 : i32, i32, i32
  }
  func.func @transform_12(%arg0: i32) -> (i32, i32, i32) {
    %c0_i32 = arith.constant 0 : i32
    %c0_i32_0 = arith.constant 0 : i32
    %c0_i32_1 = arith.constant 0 : i32
    %c0_i32_2 = arith.constant 0 : i32
    return %c0_i32, %c0_i32_0, %c0_i32_1 : i32, i32, i32
  }
  func.func @transform_13(%arg0: i32) -> (i32, i32, i32) {
    %c0_i32 = arith.constant 0 : i32
    %c0_i32_0 = arith.constant 0 : i32
    %c0_i32_1 = arith.constant 0 : i32
    %c0_i32_2 = arith.constant 0 : i32
    return %c0_i32, %c0_i32_0, %c0_i32_1 : i32, i32, i32
  }
  func.func @transform_14(%arg0: i32) -> (i32, i32, i32) {
    %c0_i32 = arith.constant 0 : i32
    %c0_i32_0 = arith.constant 0 : i32
    %c0_i32_1 = arith.constant 0 : i32
    %c0_i32_2 = arith.constant 0 : i32
    return %c0_i32, %c0_i32_0, %c0_i32_1 : i32, i32, i32
  }
  func.func @transform_15(%arg0: i32) -> (i32, i32, i32) {
    %c0_i32 = arith.constant 0 : i32
    %c0_i32_0 = arith.constant 0 : i32
    %c0_i32_1 = arith.constant 0 : i32
    %c0_i32_2 = arith.constant 0 : i32
    return %c0_i32, %c0_i32_0, %c0_i32_1 : i32, i32, i32
  }
  func.func @transform_16(%arg0: i32) -> (i32, i32, i32) {
    %c0_i32 = arith.constant 0 : i32
    %c0_i32_0 = arith.constant 0 : i32
    %c0_i32_1 = arith.constant 0 : i32
    return %arg0, %c0_i32, %c0_i32_0 : i32, i32, i32
  }
}

</mosaic_0001>

<bundles_post_ra>
// kernel: similarity_classifier_forward.1
= control target key start
LH: loop header
LB: loop body
LE: loop exit
PB: predicated region body
PF: predicated region fallthrough
CT: control target
= control target key end

     0   :  { %s3716_s0 = inlined_call_operand.vmem [shape: f32[2,8,32], index: 0, kind: input, shape index: {}]   ;;  %s3717_s1 = inlined_call_operand.vmem [shape: f32[2,8,8], index: 1, kind: input, shape index: {}]   ;;  %s3718_s2 = inlined_call_operand.vmem [shape: f32[1,32], index: 2, kind: input, shape index: {}]   ;;  %s3719_s3 = inlined_call_operand.vmem [shape: f32[1,32], index: 3, kind: input, shape index: {}]   ;;  %s3720_s4 = inlined_call_operand.vmem [shape: bf16[2,3,2,32,16], index: 4, kind: input, shape index: {}]   ;;  %s3721_s5 = inlined_call_operand.vmem [shape: f32[2,3,2,1,16], index: 5, kind: input, shape index: {}]   ;;  %s3722_s6 = inlined_call_operand.vmem [shape: bf16[2,2,16,32], index: 6, kind: input, shape index: {}]   ;;  %s3723_s7 = inlined_call_operand.vmem [shape: f32[2,1,32], index: 7, kind: input, shape index: {}]   ;;  %s3724_s8 = inlined_call_operand.vmem [shape: f32[2,1,32], index: 8, kind: input, shape index: {}]   ;;  %s3725_s9 = inlined_call_operand.vmem [shape: f32[2,1,32], index: 9, kind: input, shape index: {}]   ;;  %s3726_s10 = inlined_call_operand.vmem [shape: bf16[2,32,64], index: 10, kind: input, shape index: {}]   ;;  %s3727_s11 = inlined_call_operand.vmem [shape: f32[2,1,64], index: 11, kind: input, shape index: {}]   ;;  %s3728_s12 = inlined_call_operand.vmem [shape: bf16[2,64,32], index: 12, kind: input, shape index: {}]   ;;  %s3729_s13 = inlined_call_operand.vmem [shape: f32[2,1,32], index: 13, kind: input, shape index: {}]   ;;  %s3730_s14 = inlined_call_operand.vmem [shape: f32[2,1,32], index: 14, kind: input, shape index: {}]   ;;  %s3731_s15 = inlined_call_operand.vmem [shape: f32[2,1,32], index: 15, kind: input, shape index: {}]   ;;  %s3732_s16 = inlined_call_operand.hbm [shape: f32[2,1,32], index: 16, kind: output, shape index: {}]  }
   0x1   :  { %3737 = sst [smem:[#allocation9_spill]] %s3716_s0 }
   0x2   :  { %3738 = sst [smem:[#allocation10_spill]] %s3717_s1 }
   0x3   :  { %21 = vsyncpa [#allocation3], 0 }
   0x4   :  { %23 = vsyncpa [#allocation3 + $0x1], 0  ;;  %s3211_s21 = smov 0   ;;  %s3213_s22 = smov 0  }
   0x5   :  { %s3215_s23 = smov 0   ;;  %s3217_s24 = smov 0  }
   0x6 LB: > { %3739 = sst [smem:[#allocation5_spill]] %s3117_s23  ;;  %s3232_s25 = sadd.s32 4294967295, %s3121_s24   ;;  %s3121_s24 = sphi %s3217_s24, %s3748_s24   ;;  %s3117_s23 = sphi %s3215_s23, %s3750_s23   ;;  %s3113_s22 = sphi %s3213_s22, %s3752_s22   ;;  %s3109_s21 = sphi %s3211_s21, %s3751_s21  }
   0x7   : > { %s2488_s26 = sadd.s32 4294967294, %s3121_s24   ;;  %s3236_s27 = sadd.s32 1, %s3121_s24  }
   0x8   : > { %3740 = sst [smem:[#allocation6_spill]] %s3236_s27  ;;  %s382_s28 = sadd.s32 1, %s3117_s23 }
   0x9   : > { %s379_s29 = ssub.s32 %s3121_s24, %s3236_s27  ;;  %p392_p0 = scmp.ne.s32.totalorder %s3117_s23, %s3113_s22 }
   0xa   : > { %p380_p1 = scmp.eq.s32.totalorder %s379_s29, 0  ;;  %p393_p2 = scmp.eq.s32.totalorder %s3232_s25, 1 }
   0xb   : > { %p398_p3 = scmp.ne.s32.totalorder %s3113_s22, %s3109_s21  ;;  %p399_p4 = scmp.eq.s32.totalorder %s2488_s26, 1 }
   0xc   : > { %s3247_s30 = scalar_select %p380_p1, %s3117_s23, %s382_s28  }
   0xd   : > { %p3249_p5 = por %p393_p2, %p392_p0  ;;  %p3253_p6 = por %p399_p4, %p398_p3 }
   0xe   : > { %3741 = sst [smem:[#allocation7_spill]] %s3247_s30  ;;  %p2491_p7 = scmp.ge.s32.totalorder %s3121_s24, 1 }
   0xf   : > { %s3743_s17 = scalar_select %p3253_p6, 1, 0 }
  0x10   : > { %p473_p8 = scmp.lt.s32.totalorder %s3121_s24, 3 }
  0x11   : > { %3744 = sst [smem:[#allocation8_spill]] %s3743_s17 }
  0x12   : > { %p474_p9 = pnand %p2491_p7, %p473_p8 }
  0x13   : > { %p525_p10 = scmp.lt.s32.totalorder (!%p474_p9), %s3232_s25, 1  ;;  %vm538_vm0 = vcmask (!%p474_p9), 261120   ;;  %s3745_s28 = sld [smem:[#allocation9_spill]] (!%p474_p9)  ;;  %v2989_v7 = vld [vmem:[%s3720_s4] sm:$0xff] (!%p474_p9)   ;;  %v3123_v9 = vmov (!%p474_p9), 0.0   ;;  %v2991_v10 = vld [vmem:[%s3720_s4 + $0x8] sm:$0xff] (!%p474_p9)  }
  0x14   : > { %477 = sbr.rel (%p474_p9) target bundleno = 6449 (0x1931), region = 84  ;;  %v2990_v8 = vld [vmem:[%s3720_s4 + $0x40] sm:$0xff] (!%p474_p9)   ;;  %2740 = vmatprep.subr.bf16.mxu1 (!%p474_p9), %v3123_v9  ;;  %2756 = vmatprep.subr.bf16.mxu0 (!%p474_p9), %v3123_v9  ;;  %v2992_v11 = vld [vmem:[%s3720_s4 + $0x48] sm:$0xff] (!%p474_p9)   ;;  %vm3124_vm1 = vmmov (!%p474_p9), 0   ;;  %vm830_vm2 = vcmask (!%p474_p9), 1043456   ;;  %vm766_vm3 = vcmask (!%p474_p9), 130048  }
  0x15   : > { %2741 = vmatpush3.bf16.msra.mxu1 (!%p474_p9), %v2989_v7  ;;  %2757 = vmatpush3.bf16.msra.mxu0 (!%p474_p9), %v2990_v8  ;;  %v2494_v16 = vld [vmem:[%s3718_s2] ss:$0 sm:$0xff] (!%p474_p9)  ;;  %v2994_v23 = vld [vmem:[%s3720_s4 + $0x28] sm:$0xff] (!%p474_p9)   ;;  %v2514_v24 = vld [vmem:[%s3721_s5 + $0x4] ss:$0 sm:$0xff] (!%p474_p9)  ;;  %s3746_s1 = sld [smem:[#allocation10_spill]] (!%p474_p9) }
  0x16   : > { %2742 = vmatprep.subr.bf16.mxu1 (!%p474_p9), %v3123_v9  ;;  %2758 = vmatprep.subr.bf16.mxu0 (!%p474_p9), %v3123_v9  ;;  %v2495_v18 = vld [vmem:[%s3719_s3] ss:$0 sm:$0xff] (!%p474_p9)  ;;  %v2505_v36 = vld [vmem:[%s3721_s5 + $0x2] ss:$0 sm:$0xff] (!%p474_p9)  ;;  %v2995_v46 = vld [vmem:[%s3720_s4 + $0x10] sm:$0xff] (!%p474_p9)   ;;  %vm813_vm4 = vcmask (!%p474_p9), 64512  }
  0x17   : > { %2744 = vmatprep.mubr.msk.bf16.mxu1 (!%p474_p9), %vm3124_vm1, %v3123_v9  ;;  %2760 = vmatprep.mubr.msk.bf16.mxu0 (!%p474_p9), %vm3124_vm1, %v3123_v9  ;;  %v2993_v21 = vld [vmem:[%s3720_s4 + $0x20] sm:$0xff] (!%p474_p9)   ;;  %v2996_v48 = vld [vmem:[%s3720_s4 + $0x18] sm:$0xff] (!%p474_p9)   ;;  %v2997_v49 = vld [vmem:[%s3720_s4 + $0x50] sm:$0xff] (!%p474_p9)   ;;  %vm1435_vm5 = vcmask (!%p474_p9), 523264   ;;  %vm1750_vm6 = vcmask (!%p474_p9), 57344   ;;  %vm2220_vm7 = vcmask (!%p474_p9), 253952  }
  0x18   : > { %v2496_v43 = vld [vmem:[%s3721_s5] ss:$0 sm:$0xff] (!%p474_p9)  ;;  %v2998_v50 = vld [vmem:[%s3720_s4 + $0x58] sm:$0xff] (!%p474_p9)   ;;  %v2543_v62 = vld [vmem:[%s3721_s5 + $0x5] ss:$0 sm:$0xff] (!%p474_p9)  ;;  %s2661_s23 = sshll.u32 (!%p474_p9), %s3232_s25, 4 }
  0x19   : > { %2743 = vmatpush3.bf16.msra.mxu1 (!%p474_p9), %v2991_v10  ;;  %2759 = vmatpush3.bf16.msra.mxu0 (!%p474_p9), %v2992_v11 }
  0x1a   : > { %2748 = vmatprep.subr.bf16.mxu1 (!%p474_p9), %v3123_v9  ;;  %2770 = vmatprep.subr.bf16.mxu0 (!%p474_p9), %v3123_v9 }
  0x1b   : > { %s3261_s18 = scalar_select %p525_p10, %s3232_s25, 1 }
  0x1c   : > { %s3125_s25 = smov [#allocation2]  }
  0x1d   : > { %s2492_s19 = sshll.u32 %s3261_s18, 3  ;;  %s3063_s20 = sshll.u32 %s3125_s25, 4  ;;  %s3064_s20 = int_to_ptr.vmem [resolvable:$false] %s3063_s20 }
  0x1e   : > { %s528_s29 = scalar_lea.vmem %s3745_s28, %s2492_s19  ;;  %s532_s27 = scalar_lea.vmem %s3746_s1, %s2492_s19 }
  0x1f   : > { %v535_v0 = vld [vmem:[%s528_s29] sm:$0xff]  ;;  %s523_s19 = sand.u32 1, %s3113_s22   ;;  %s3673_s1 = scalar_lea.hbm %s3732_s16, %s2661_s23 }
  0x20   : > { %v539_v1 = vsel %vm538_vm0, %v535_v0, 0.0  ;;  %v3370_v51 = vld [vmem:[%s532_s27] sm:$0xff]  ;;  %s524_s30 = scalar_lea.vmem [#allocation2], %s523_s19  ;;  %s2409_s28 = scalar_lea.sflag [#allocation3], %s523_s19 }
  0x21   : > { %540 = vadd.xlane.f32.xlu0 %v539_v1  ;;  %s2421_s27 = sshll.u32 %s524_s30, 4  ;;  %s3065_s26 = scalar_lea.vmem %s3064_s20, 32  ;;  %s3675_s27 = int_to_ptr.vmem [resolvable:$true] %s2421_s27 }
  0x22   : > { %s3059_s29 = scalar_lea.vmem %s3675_s27, 16  ;;  %p3066_p0 = scmp.lt.s32.totalorder %s3675_s27, %s3064_s20 }
  0x23   : > { %p3060_p11 = scmp.ne.s32.totalorder %s3675_s27, %s3059_s29  ;;  %p3067_p1 = scmp.lt.s32.totalorder %s3065_s26, %s3059_s29 }
  0x25   : > { %p3061_p12 = pnand %p3060_p11, %p3249_p5  ;;  %p3068_p2 = por %p3067_p1, %p3066_p0 }
  0x27   : > { %p3062_p13 = pneg %p3061_p12 }
  0x29   : > { %p3069_p3 = pnand %p3068_p2, %p3062_p13 }
  0xae   : > { %v541_v2 = vpop.xlane.xlu0 %540 }
  0xaf   : > { %v543_v3 = vmul.f32 0.03125, %v541_v2 }
  0xb1   : > { %v544_v4 = vsub.f32 %v535_v0, %v543_v3 }
  0xb3   : > { %v545_v5 = vmul.f32 %v544_v4, %v544_v4 }
  0xb5   : > { %v546_v6 = vsel %vm538_vm0, %v545_v5, 0.0 }
  0xb6   : > { %547 = vadd.xlane.f32.xlu0 %v546_v6 }
 0x143   : > { %v548_v12 = vpop.xlane.xlu0 %547 }
 0x144   : > { %v549_v13 = vmul.f32 0.03125, %v548_v12 }
 0x146   : > { %v550_v14 = vadd.f32 1e-12, %v549_v13 }
 0x148   : > { %3029 = vrsqrt.f32 %v550_v14 }
 0x152   : > { %v3030_v15 = vpop.eup %3029 }
 0x153   : > { %v552_v17 = vmul.f32 %v3030_v15, %v544_v4  ;;  %v2999_v15 = vld [vmem:[%s3720_s4 + $0x30] sm:$0xff]  }
 0x155   : > { %v559_v19 = vmul.f32 %v2494_v16, %v552_v17  ;;  %v3000_v17 = vld [vmem:[%s3720_s4 + $0x38] sm:$0xff]  }
 0x157   : > { %v3299_v20 = vadd.f32 %v2495_v18, %v559_v19 }
 0x159   : > { %v3306_v22 = vpack.c.bf16 %v3299_v20, %v3299_v20 }
 0x15b   : > { %2745 = vmatmul.mubr.msk.bf16.vlgmr.msra.gmra.mrb[0].mxu1 %vm538_vm0, %v3306_v22  ;;  %2761 = vmatmul.mubr.msk.bf16.vlgmr.msra.gmra.mrb[0].mxu0 %vm538_vm0, %v3306_v22 }
 0x15c   : > { %2749 = vmatpush3.bf16.msra.mxu1 %v2993_v21  ;;  %2752 = vmatprep.mubr.msk.bf16.mxu1 %vm3124_vm1, %v3123_v9 }
 0x15d   : > { %2750 = vmatprep.subr.bf16.mxu1 %v3123_v9  ;;  %2772 = vmatprep.mubr.msk.bf16.mxu0 %vm3124_vm1, %v3123_v9 }
 0x160   : > { %2751 = vmatpush3.bf16.msra.mxu1 %v2994_v23 }
 0x161   : > { %2764 = vmatprep.subr.bf16.mxu1 %v3123_v9 }
 0x163   : > { %2753 = vmatmul.mubr.msk.bf16.vlgmr.msra.gmra.mrb[4].mxu1 %vm538_vm0, %v3306_v22 }
 0x164   : > { %2766 = vmatprep.mubr.msk.bf16.mxu1 %vm3124_vm1, %v3123_v9 }
 0x22e   : > { %v628_v25 = vpop.f32.mrb[0].mxu1  ;;  %v758_v26 = vpop.f32.mrb[0].mxu0 }
 0x22f   : > { %v759_v27 = vadd.f32 %v2514_v24, %v758_v26  ;;  %v2746_v28 = vpop.f32.mrb[1].mxu1  ;;  %v2762_v29 = vpop.f32.mrb[1].mxu0  ;;  %v629_v45 = vadd.f32 %v2496_v43, %v628_v25  ;;  %v2534_v24 = vld [vmem:[%s3721_s5 + $0x3] ss:$0 sm:$0xff] }
 0x230   : > { %v631_v30 = vpop.f32.mrb[2].mxu1  ;;  %v761_v31 = vpop.f32.mrb[2].mxu0 }
 0x231   : > { %v826_v32 = vpack.c.bf16 %v759_v27, %v759_v27  ;;  %v2747_v33 = vpop.f32.mrb[3].mxu1  ;;  %v2763_v34 = vpop.f32.mrb[3].mxu0  ;;  %v764_v47 = vpack.c.bf16 %v629_v45, %v629_v45  ;;  %v3002_v45 = vld [vmem:[%s3722_s6 + $0x8] sm:$0xff]  }
 0x233   : > { %v832_v35 = vsel %vm830_vm2, %v826_v32, 0 }
 0x234   : > { %2771 = vmatpush3.bf16.msra.mxu0 %v832_v35 }
 0x235   : > { %2784 = vmatprep.subr.bf16.mxu0 %v3123_v9 }
 0x236   : > { %v693_v37 = vpop.f32.mrb[4].mxu1 }
 0x237   : > { %v694_v38 = vadd.f32 %v2505_v36, %v693_v37  ;;  %v2754_v39 = vpop.f32.mrb[5].mxu1 }
 0x238   : > { %v696_v40 = vpop.f32.mrb[6].mxu1 }
 0x239   : > { %v765_v41 = vpack.c.bf16 %v694_v38, %v694_v38  ;;  %v2755_v42 = vpop.f32.mrb[7].mxu1 }
 0x23b   : > { %v771_v44 = vsel %vm766_vm3, %v765_v41, 0 }
 0x23c   : > { %2765 = vmatpush3.bf16.xpose.msra.mxu1 %v771_v44 }
 0x23d   : > { %2776 = vmatprep.subr.bf16.mxu1 %v3123_v9 }
 0x243   : > { %2767 = vmatmul.mubr.msk.bf16.vlgmr.msra.gmra.mrb[8].mxu1 %vm766_vm3, %v764_v47 }
 0x244   : > { %2777 = vmatpush3.bf16.msra.mxu1 %v2995_v46  ;;  %2780 = vmatprep.mubr.msk.bf16.mxu1 %vm3124_vm1, %v3123_v9 }
 0x245   : > { %2778 = vmatprep.subr.bf16.mxu1 %v3123_v9 }
 0x248   : > { %2779 = vmatpush3.bf16.msra.mxu1 %v2996_v48 }
 0x249   : > { %2792 = vmatprep.subr.bf16.mxu1 %v3123_v9 }
 0x24b   : > { %2781 = vmatmul.mubr.msk.bf16.vlgmr.msra.gmra.mrb[12].mxu1 %vm538_vm0, %v3306_v22 }
 0x24c   : > { %2793 = vmatpush3.bf16.msra.mxu1 %v2997_v49  ;;  %2796 = vmatprep.mubr.msk.bf16.mxu1 %vm3124_vm1, %v3123_v9  ;;  %v3001_v49 = vld [vmem:[%s3722_s6] sm:$0xff]  }
 0x24d   : > { %2794 = vmatprep.subr.bf16.mxu1 %v3123_v9 }
 0x250   : > { %2795 = vmatpush3.bf16.msra.mxu1 %v2998_v50 }
 0x251   : > { %2806 = vmatprep.subr.bf16.mxu1 %v3123_v9 }
 0x253   : > { %2797 = vmatmul.mubr.msk.bf16.vlgmr.msra.gmra.mrb[16].mxu1 %vm538_vm0, %v3306_v22 }
 0x254   : > { %2808 = vmatprep.mubr.msk.bf16.mxu1 %vm3124_vm1, %v3123_v9 }
 0x316   : > { %v807_v52 = vpop.f32.mrb[8].mxu1 }
 0x317   : > { %v808_v53 = vadd.f32 %v807_v52, %v3370_v51  ;;  %v2768_v54 = vpop.f32.mrb[9].mxu1 }
 0x318   : > { %v810_v55 = vpop.f32.mrb[10].mxu1 }
 0x319   : > { %v2769_v56 = vpop.f32.mrb[11].mxu1  ;;  %v814_v57 = vsel %vm813_vm4, %v808_v53, -inf }
 0x31a   : > { %815 = vmax.xlane.f32.xlu1 %v814_v57 }
 0x31e   : > { %v936_v58 = vpop.f32.mrb[12].mxu1 }
 0x31f   : > { %v2782_v59 = vpop.f32.mrb[13].mxu1 }
 0x320   : > { %v939_v60 = vpop.f32.mrb[14].mxu1 }
 0x321   : > { %v2783_v61 = vpop.f32.mrb[15].mxu1 }
 0x326   : > { %v1066_v63 = vpop.f32.mrb[16].mxu1 }
 0x327   : > { %v1067_v0 = vadd.f32 %v2543_v62, %v1066_v63  ;;  %v2798_v1 = vpop.f32.mrb[17].mxu1  ;;  %v2555_v63 = vld [vmem:[%s3723_s7] ss:$0 sm:$0xff] }
 0x328   : > { %v1069_v2 = vpop.f32.mrb[18].mxu1 }
 0x329   : > { %v1132_v3 = vpack.c.bf16 %v1067_v0, %v1067_v0  ;;  %v2799_v4 = vpop.f32.mrb[19].mxu1 }
 0x32b   : > { %v1137_v5 = vsel %vm830_vm2, %v1132_v3, 0 }
 0x32c   : > { %2807 = vmatpush3.bf16.msra.mxu1 %v1137_v5 }
 0x32d   : > { %2818 = vmatprep.subr.bf16.mxu1 %v3123_v9 }
 0x3a7   : > { %v816_v6 = vpop.xlane.xlu1 %815 }
 0x3a8   : > { %v817_v7 = vsub.f32 %v808_v53, %v816_v6 }
 0x3aa   : > { %v818_v8 = vmul.f32 1.442695, %v817_v7 }
 0x3ac   : > { %3031 = vpow2.f32 %v818_v8 }
 0x3b6   : > { %v3032_v10 = vpop.eup %3031 }
 0x3b7   : > { %v820_v11 = vsel %vm813_vm4, %v3032_v10, 0.0 }
 0x3b8   : > { %821 = vadd.xlane.f32.xlu1 %v820_v11 }
 0x445   : > { %v822_v12 = vpop.xlane.xlu1 %821 }
 0x446   : > { %3033 = vrcp.f32 %v822_v12 }
 0x450   : > { %v3034_v13 = vpop.eup %3033 }
 0x451   : > { %v824_v14 = vmul.f32 %v3034_v13, %v3032_v10  ;;  %v3003_v13 = vld [vmem:[%s3726_s10] sm:$0xff]  }
 0x453   : > { %v825_v16 = vpack.c.bf16 %v824_v14, %v824_v14 }
 0x455   : > { %2773 = vmatmul.mubr.msk.bf16.vlgmr.msra.gmra.mrb[4].mxu0 %vm813_vm4, %v825_v16 }
 0x456   : > { %2785 = vmatpush3.bf16.msra.mxu0 %v2999_v15  ;;  %2788 = vmatprep.mubr.msk.bf16.mxu0 %vm3124_vm1, %v3123_v9 }
 0x457   : > { %2786 = vmatprep.subr.bf16.mxu0 %v3123_v9 }
 0x45a   : > { %2787 = vmatpush3.bf16.msra.mxu0 %v3000_v17 }
 0x45b   : > { %2800 = vmatprep.subr.bf16.mxu0 %v3123_v9 }
 0x45d   : > { %2789 = vmatmul.mubr.msk.bf16.vlgmr.msra.gmra.mrb[8].mxu0 %vm538_vm0, %v3306_v22  ;;  %v2525_v22 = vld [vmem:[%s3721_s5 + $0x1] ss:$0 sm:$0xff] }
 0x45e   : > { %2802 = vmatprep.mubr.msk.bf16.mxu0 %vm3124_vm1, %v3123_v9  ;;  %v937_v32 = vadd.f32 %v2525_v22, %v936_v58 }
 0x460   : > { %v1072_v33 = vpack.c.bf16 %v937_v32, %v937_v32 }
 0x528   : > { %v868_v18 = vpop.f32.mrb[4].mxu0 }
 0x529   : > { %v2774_v19 = vpop.f32.mrb[5].mxu0  ;;  %v874_v52 = vpack.c.bf16 %v868_v18, %v868_v18  ;;  %v2556_v18 = vld [vmem:[%s3724_s8] ss:$0 sm:$0xff] }
 0x52a   : > { %v871_v21 = vpop.f32.mrb[6].mxu0 }
 0x52b   : > { %v2775_v23 = vpop.f32.mrb[7].mxu0  ;;  %v2557_v21 = vld [vmem:[%s3725_s9] ss:$0 sm:$0xff] }
 0x530   : > { %v1001_v25 = vpop.f32.mrb[8].mxu0 }
 0x531   : > { %v1002_v26 = vadd.f32 %v2534_v24, %v1001_v25  ;;  %v2790_v27 = vpop.f32.mrb[9].mxu0 }
 0x532   : > { %v1004_v28 = vpop.f32.mrb[10].mxu0  ;;  %v3006_v27 = vld [vmem:[%s3728_s12 + $0x8] sm:$0xff]  }
 0x533   : > { %v1073_v29 = vpack.c.bf16 %v1002_v26, %v1002_v26  ;;  %v2791_v30 = vpop.f32.mrb[11].mxu0  ;;  %v3005_v26 = vld [vmem:[%s3728_s12] sm:$0xff]   ;;  %v3007_v28 = vld [vmem:[%s3728_s12 + $0x10] sm:$0xff]  }
 0x534   : > { %v2558_v30 = vld [vmem:[%s3727_s11] ss:$0 sm:$0xff] }
 0x535   : > { %v1078_v31 = vsel %vm766_vm3, %v1073_v29, 0  ;;  %v3008_v29 = vld [vmem:[%s3728_s12 + $0x18] sm:$0xff]  }
 0x536   : > { %2801 = vmatpush3.bf16.xpose.msra.mxu0 %v1078_v31 }
 0x537   : > { %2812 = vmatprep.subr.bf16.mxu0 %v3123_v9 }
 0x53d   : > { %2803 = vmatmul.mubr.msk.bf16.vlgmr.msra.gmra.mrb[12].mxu0 %vm766_vm3, %v1072_v33 }
 0x53e   : > { %2814 = vmatprep.mubr.msk.bf16.mxu0 %vm3124_vm1, %v3123_v9  ;;  %2813 = vmatpush3.bf16.msra.mxu0 %v3002_v45  ;;  %v2562_v45 = vld [vmem:[%s3729_s13] ss:$0 sm:$0xff] }
 0x53f   : > { %2824 = vmatprep.subr.bf16.mxu0 %v3123_v9 }
 0x610   : > { %v1114_v34 = vpop.f32.mrb[12].mxu0 }
 0x611   : > { %v1115_v35 = vadd.f32 %v1114_v34, %v3370_v51  ;;  %v2804_v36 = vpop.f32.mrb[13].mxu0 }
 0x612   : > { %v1117_v37 = vpop.f32.mrb[14].mxu0 }
 0x613   : > { %v2805_v38 = vpop.f32.mrb[15].mxu0  ;;  %v1120_v39 = vsel %vm813_vm4, %v1115_v35, -inf }
 0x614   : > { %1121 = vmax.xlane.f32.xlu0 %v1120_v39 }
 0x6a1   : > { %v1122_v40 = vpop.xlane.xlu0 %1121 }
 0x6a2   : > { %v1123_v41 = vsub.f32 %v1115_v35, %v1122_v40 }
 0x6a4   : > { %v1124_v42 = vmul.f32 1.442695, %v1123_v41 }
 0x6a6   : > { %3035 = vpow2.f32 %v1124_v42 }
 0x6b0   : > { %v3036_v43 = vpop.eup %3035 }
 0x6b1   : > { %v1126_v44 = vsel %vm813_vm4, %v3036_v43, 0.0 }
 0x6b2   : > { %1127 = vadd.xlane.f32.xlu1 %v1126_v44 }
 0x73f   : > { %v1128_v46 = vpop.xlane.xlu1 %1127 }
 0x740   : > { %3037 = vrcp.f32 %v1128_v46 }
 0x74a   : > { %v3038_v47 = vpop.eup %3037 }
 0x74b   : > { %v1130_v48 = vmul.f32 %v3038_v47, %v3036_v43 }
 0x74d   : > { %v1131_v50 = vpack.c.bf16 %v1130_v48, %v1130_v48 }
 0x74f   : > { %2809 = vmatmul.mubr.msk.bf16.vlgmr.msra.gmra.mrb[20].mxu1 %vm813_vm4, %v1131_v50 }
 0x750   : > { %2819 = vmatpush3.bf16.msra.mxu1 %v3001_v49  ;;  %2820 = vmatprep.mubr.msk.bf16.mxu1 %vm3124_vm1, %v3123_v9 }
 0x751   : > { %2832 = vmatprep.subr.bf16.mxu1 %v3123_v9 }
 0x757   : > { %2821 = vmatmul.mubr.msk.bf16.vlgmr.msra.gmra.mrb[24].mxu1 %vm766_vm3, %v874_v52 }
 0x758   : > { %2840 = vmatprep.mubr.msk.bf16.mxu1 %vm3124_vm1, %v3123_v9  ;;  %2833 = vmatpush3.bf16.msra.mxu1 %v3005_v26 }
 0x759   : > { %2834 = vmatprep.subr.bf16.mxu1 %v3123_v9 }
 0x75c   : > { %2835 = vmatpush3.bf16.msra.mxu1 %v3006_v27 }
 0x75d   : > { %2836 = vmatprep.subr.bf16.mxu1 %v3123_v9 }
 0x760   : > { %2837 = vmatpush3.bf16.msra.mxu1 %v3007_v28 }
 0x761   : > { %2838 = vmatprep.subr.bf16.mxu1 %v3123_v9 }
 0x764   : > { %2839 = vmatpush3.bf16.msra.mxu1 %v3008_v29 }
 0x765   : > { %2860 = vmatprep.subr.bf16.mxu1 %v3123_v9 }
 0x822   : > { %v1173_v53 = vpop.f32.mrb[20].mxu1 }
 0x823   : > { %v1179_v54 = vpack.c.bf16 %v1173_v53, %v1173_v53  ;;  %v2810_v55 = vpop.f32.mrb[21].mxu1 }
 0x824   : > { %v1176_v56 = vpop.f32.mrb[22].mxu1 }
 0x825   : > { %v2811_v57 = vpop.f32.mrb[23].mxu1  ;;  %2815 = vmatmul.mubr.msk.bf16.vlgmr.msra.gmra.mrb[16].mxu0 %vm766_vm3, %v1179_v54 }
 0x826   : > { %2828 = vmatprep.mubr.msk.bf16.mxu0 %vm3124_vm1, %v3123_v9  ;;  %2825 = vmatpush3.bf16.msra.mxu0 %v3003_v13 }
 0x827   : > { %2826 = vmatprep.subr.bf16.mxu0 %v3123_v9 }
 0x82a   : > { %v1275_v58 = vpop.f32.mrb[24].mxu1 }
 0x82b   : > { %v2822_v59 = vpop.f32.mrb[25].mxu1 }
 0x82c   : > { %v1278_v60 = vpop.f32.mrb[26].mxu1  ;;  %v3009_v59 = vld [vmem:[%s3720_s4 + $0x60] sm:$0xff]  }
 0x82d   : > { %v2823_v61 = vpop.f32.mrb[27].mxu1  ;;  %v3010_v60 = vld [vmem:[%s3720_s4 + $0xa0] sm:$0xff]  }
 0x82e   : > { %v3011_v61 = vld [vmem:[%s3720_s4 + $0x68] sm:$0xff]  }
 0x8f8   : > { %v1226_v62 = vpop.f32.mrb[16].mxu0 }
 0x8f9   : > { %v1276_v0 = vadd.f32 %v1275_v58, %v1226_v62  ;;  %v2816_v1 = vpop.f32.mrb[17].mxu0  ;;  %v3012_v62 = vld [vmem:[%s3720_s4 + $0xa8] sm:$0xff]  }
 0x8fa   : > { %v1229_v2 = vpop.f32.mrb[18].mxu0 }
 0x8fb   : > { %v1288_v3 = vadd.f32 %v2555_v63, %v1276_v0  ;;  %v2817_v4 = vpop.f32.mrb[19].mxu0 }
 0x8fd   : > { %v1289_v5 = vadd.f32 %v1288_v3, %v3299_v20  ;;  %v3004_v20 = vld [vmem:[%s3726_s10 + $0x8] sm:$0xff]   ;;  %v2568_v3 = vld [vmem:[%s3730_s14] ss:$0 sm:$0xff] }
 0x8fe   : > { %2827 = vmatpush3.bf16.msra.mxu0 %v3004_v20 }
 0x8ff   : > { %v1292_v6 = vsel %vm538_vm0, %v1289_v5, 0.0  ;;  %2844 = vmatprep.subr.bf16.mxu0 %v3123_v9 }
 0x900   : > { %1293 = vadd.xlane.f32.xlu0 %v1292_v6 }
 0x98d   : > { %v1294_v7 = vpop.xlane.xlu0 %1293 }
 0x98e   : > { %v1295_v8 = vmul.f32 0.03125, %v1294_v7 }
 0x990   : > { %v1296_v10 = vsub.f32 %v1289_v5, %v1295_v8  ;;  %v2569_v5 = vld [vmem:[%s3731_s15] ss:$0 sm:$0xff] }
 0x991   : > { %v3013_v8 = vld [vmem:[%s3720_s4 + $0x80] sm:$0xff]  }
 0x992   : > { %v1297_v11 = vmul.f32 %v1296_v10, %v1296_v10 }
 0x994   : > { %v1298_v12 = vsel %vm538_vm0, %v1297_v11, 0.0  ;;  %v3014_v11 = vld [vmem:[%s3720_s4 + $0x88] sm:$0xff]  }
 0x995   : > { %1299 = vadd.xlane.f32.xlu1 %v1298_v12  ;;  %v2592_v12 = vld [vmem:[%s3721_s5 + $0xa] ss:$0 sm:$0xff] }
 0xa22   : > { %v1300_v14 = vpop.xlane.xlu1 %1299 }
 0xa23   : > { %v1301_v15 = vmul.f32 0.03125, %v1300_v14 }
 0xa25   : > { %v1302_v16 = vadd.f32 1e-12, %v1301_v15 }
 0xa27   : > { %3039 = vrsqrt.f32 %v1302_v16 }
 0xa31   : > { %v3040_v17 = vpop.eup %3039 }
 0xa32   : > { %v1304_v19 = vmul.f32 %v3040_v17, %v1296_v10 }
 0xa34   : > { %v1311_v23 = vmul.f32 %v2556_v18, %v1304_v19 }
 0xa36   : > { %v1318_v24 = vadd.f32 %v2557_v21, %v1311_v23 }
 0xa38   : > { %v1319_v25 = vpack.c.bf16 %v1318_v24, %v1318_v24 }
 0xa3a   : > { %2829 = vmatmul.mubr.msk.bf16.vlgmr.msra.gmra.mrb[20].mxu0 %vm538_vm0, %v1319_v25  ;;  %v2583_v25 = vld [vmem:[%s3721_s5 + $0x8] ss:$0 sm:$0xff] }
 0xa3b   : > { %2848 = vmatprep.mubr.msk.bf16.mxu0 %vm3124_vm1, %v3123_v9  ;;  %2845 = vmatpush3.bf16.msra.mxu0 %v3009_v59 }
 0xa3c   : > { %2846 = vmatprep.subr.bf16.mxu0 %v3123_v9 }
 0xa3f   : > { %2847 = vmatpush3.bf16.msra.mxu0 %v3011_v61 }
 0xa40   : > { %2852 = vmatprep.subr.bf16.mxu0 %v3123_v9 }
 0xb0d   : > { %v1380_v22 = vpop.f32.mrb[20].mxu0 }
 0xb0e   : > { %v1381_v31 = vadd.f32 %v2558_v30, %v1380_v22  ;;  %v2830_v32 = vpop.f32.mrb[21].mxu0 }
 0xb0f   : > { %v1383_v33 = vpop.f32.mrb[22].mxu0 }
 0xb10   : > { %v1386_v34 = vmul.f32 %v1381_v31, %v1381_v31  ;;  %v2831_v35 = vpop.f32.mrb[23].mxu0 }
 0xb12   : > { %v1387_v36 = vmul.f32 %v1386_v34, %v1381_v31  ;;  %v3015_v34 = vld [vmem:[%s3720_s4 + $0x70] sm:$0xff]  }
 0xb14   : > { %v1388_v37 = vmul.f32 0.044715, %v1387_v36  ;;  %v3016_v36 = vld [vmem:[%s3720_s4 + $0x78] sm:$0xff]  }
 0xb16   : > { %v1389_v38 = vadd.f32 %v1388_v37, %v1381_v31  ;;  %v3017_v37 = vld [vmem:[%s3720_s4 + $0xb0] sm:$0xff]  }
 0xb18   : > { %v1390_v39 = vmul.f32 0.7978846, %v1389_v38  ;;  %v3018_v38 = vld [vmem:[%s3720_s4 + $0xb8] sm:$0xff]  }
 0xb1a   : > { %3041 = vtanh.f32 %v1390_v39 }
 0xb24   : > { %v3042_v40 = vpop.eup %3041 }
 0xb25   : > { %v1392_v41 = vadd.f32 1.0, %v3042_v40 }
 0xb27   : > { %v1393_v42 = vmul.f32 0.5, %v1392_v41 }
 0xb29   : > { %v1394_v43 = vmul.f32 %v1393_v42, %v1381_v31  ;;  %v2574_v31 = vld [vmem:[%s3721_s5 + $0x6] sm:$0x1] }
 0xb2b   : > { %v1395_v44 = vpack.c.bf16 %v1394_v43, %v1394_v43 }
 0xb2d   : > { %2841 = vmatmul.mubr.msk.bf16.vlgmr.msra.gmra.mrb[28].mxu1 %vm1435_vm5, %v1395_v44 }
 0xb2e   : > { %2864 = vmatprep.mubr.msk.bf16.mxu1 %vm3124_vm1, %v3123_v9  ;;  %2861 = vmatpush3.bf16.msra.mxu1 %v3010_v60 }
 0xb2f   : > { %2862 = vmatprep.subr.bf16.mxu1 %v3123_v9 }
 0xb32   : > { %2863 = vmatpush3.bf16.msra.mxu1 %v3012_v62 }
 0xb33   : > { %2874 = vmatprep.subr.bf16.mxu1 %v3123_v9 }
 0xc00   : > { %v1473_v46 = vpop.f32.mrb[28].mxu1 }
 0xc01   : > { %v1474_v47 = vadd.f32 %v2562_v45, %v1473_v46  ;;  %v2842_v48 = vpop.f32.mrb[29].mxu1 }
 0xc02   : > { %v1476_v49 = vpop.f32.mrb[30].mxu1 }
 0xc03   : > { %v2843_v50 = vpop.f32.mrb[31].mxu1  ;;  %v1479_v52 = vadd.f32 %v1474_v47, %v1318_v24  ;;  %v2622_v49 = vld [vmem:[%s3721_s5 + $0xb] ss:$0 sm:$0xff] }
 0xc05   : > { %v1482_v53 = vsel %vm538_vm0, %v1479_v52, 0.0 }
 0xc06   : > { %1483 = vadd.xlane.f32.xlu0 %v1482_v53 }
 0xc93   : > { %v1484_v54 = vpop.xlane.xlu0 %1483 }
 0xc94   : > { %v1485_v55 = vmul.f32 0.03125, %v1484_v54 }
 0xc96   : > { %v1486_v56 = vsub.f32 %v1479_v52, %v1485_v55 }
 0xc98   : > { %v1487_v57 = vmul.f32 %v1486_v56, %v1486_v56 }
 0xc9a   : > { %v1488_v58 = vsel %vm538_vm0, %v1487_v57, 0.0 }
 0xc9b   : > { %1489 = vadd.xlane.f32.xlu1 %v1488_v58 }
 0xd28   : > { %v1490_v63 = vpop.xlane.xlu1 %1489 }
 0xd29   : > { %v1491_v0 = vmul.f32 0.03125, %v1490_v63 }
 0xd2b   : > { %v1492_v1 = vadd.f32 1e-12, %v1491_v0 }
 0xd2d   : > { %3043 = vrsqrt.f32 %v1492_v1 }
 0xd37   : > { %v3044_v2 = vpop.eup %3043 }
 0xd38   : > { %v1494_v4 = vmul.f32 %v3044_v2, %v1486_v56  ;;  %v3019_v2 = vld [vmem:[%s3720_s4 + $0x90] sm:$0xff]  }
 0xd3a   : > { %v1501_v6 = vmul.f32 %v2568_v3, %v1494_v4  ;;  %v3020_v4 = vld [vmem:[%s3720_s4 + $0x98] sm:$0xff]  }
 0xd3c   : > { %v3498_v7 = vadd.f32 %v2569_v5, %v1501_v6 }
 0xd3e   : > { %v3505_v10 = vpack.c.bf16 %v3498_v7, %v3498_v7 }
 0xd40   : > { %2849 = vmatmul.mubr.msk.bf16.vlgmr.msra.gmra.mrb[24].mxu0 %vm538_vm0, %v3505_v10  ;;  %2865 = vmatmul.mubr.msk.bf16.vlgmr.msra.gmra.mrb[32].mxu1 %vm538_vm0, %v3505_v10 }
 0xd41   : > { %2853 = vmatpush3.bf16.msra.mxu0 %v3013_v8  ;;  %2856 = vmatprep.mubr.msk.bf16.mxu0 %vm3124_vm1, %v3123_v9 }
 0xd42   : > { %2854 = vmatprep.subr.bf16.mxu0 %v3123_v9  ;;  %2876 = vmatprep.mubr.msk.bf16.mxu1 %vm3124_vm1, %v3123_v9 }
 0xd45   : > { %2855 = vmatpush3.bf16.msra.mxu0 %v3014_v11 }
 0xd46   : > { %2868 = vmatprep.subr.bf16.mxu0 %v3123_v9 }
 0xd48   : > { %2857 = vmatmul.mubr.msk.bf16.vlgmr.msra.gmra.mrb[28].mxu0 %vm538_vm0, %v3505_v10 }
 0xd49   : > { %2870 = vmatprep.mubr.msk.bf16.mxu0 %vm3124_vm1, %v3123_v9 }
 0xe13   : > { %v1566_v13 = vpop.f32.mrb[24].mxu0  ;;  %v1696_v20 = vpop.f32.mrb[32].mxu1 }
 0xe14   : > { %v1697_v14 = vadd.f32 %v2592_v12, %v1696_v20  ;;  %v2850_v15 = vpop.f32.mrb[25].mxu0  ;;  %v2866_v16 = vpop.f32.mrb[33].mxu1  ;;  %v1567_v33 = vadd.f32 %v2574_v31, %v1566_v13  ;;  %v2613_v12 = vld [vmem:[%s3721_s5 + $0x9] ss:$0 sm:$0xff] }
 0xe15   : > { %v1569_v17 = vpop.f32.mrb[26].mxu0  ;;  %v1699_v18 = vpop.f32.mrb[34].mxu1 }
 0xe16   : > { %v1763_v19 = vpack.c.bf16 %v1697_v14, %v1697_v14  ;;  %v2851_v21 = vpop.f32.mrb[27].mxu0  ;;  %v2867_v23 = vpop.f32.mrb[35].mxu1  ;;  %v1702_v35 = vpack.c.bf16 %v1567_v33, %v1567_v33  ;;  %v3022_v33 = vld [vmem:[%s3722_s6 + $0x18] sm:$0xff]  }
 0xe18   : > { %v1768_v24 = vsel %vm830_vm2, %v1763_v19, 0 }
 0xe19   : > { %2875 = vmatpush3.bf16.msra.mxu1 %v1768_v24 }
 0xe1a   : > { %2888 = vmatprep.subr.bf16.mxu1 %v3123_v9 }
 0xe1b   : > { %v1631_v26 = vpop.f32.mrb[28].mxu0 }
 0xe1c   : > { %v1632_v27 = vadd.f32 %v2583_v25, %v1631_v26  ;;  %v2858_v28 = vpop.f32.mrb[29].mxu0 }
 0xe1d   : > { %v1634_v29 = vpop.f32.mrb[30].mxu0 }
 0xe1e   : > { %v1703_v30 = vpack.c.bf16 %v1632_v27, %v1632_v27  ;;  %v2859_v22 = vpop.f32.mrb[31].mxu0 }
 0xe20   : > { %v1708_v32 = vsel %vm766_vm3, %v1703_v30, 0 }
 0xe21   : > { %2869 = vmatpush3.bf16.xpose.msra.mxu0 %v1708_v32 }
 0xe22   : > { %2880 = vmatprep.subr.bf16.mxu0 %v3123_v9 }
 0xe28   : > { %2871 = vmatmul.mubr.msk.bf16.vlgmr.msra.gmra.mrb[32].mxu0 %vm766_vm3, %v1702_v35 }
 0xe29   : > { %2881 = vmatpush3.bf16.msra.mxu0 %v3015_v34  ;;  %2884 = vmatprep.mubr.msk.bf16.mxu0 %vm3124_vm1, %v3123_v9 }
 0xe2a   : > { %2882 = vmatprep.subr.bf16.mxu0 %v3123_v9 }
 0xe2d   : > { %2883 = vmatpush3.bf16.msra.mxu0 %v3016_v36  ;;  %v3021_v36 = vld [vmem:[%s3722_s6 + $0x10] sm:$0xff]  }
 0xe2e   : > { %2896 = vmatprep.subr.bf16.mxu0 %v3123_v9 }
 0xe30   : > { %2885 = vmatmul.mubr.msk.bf16.vlgmr.msra.gmra.mrb[36].mxu0 %vm538_vm0, %v3505_v10 }
 0xe31   : > { %2897 = vmatpush3.bf16.msra.mxu0 %v3017_v37  ;;  %2900 = vmatprep.mubr.msk.bf16.mxu0 %vm3124_vm1, %v3123_v9 }
 0xe32   : > { %2898 = vmatprep.subr.bf16.mxu0 %v3123_v9 }
 0xe35   : > { %2899 = vmatpush3.bf16.msra.mxu0 %v3018_v38 }
 0xe36   : > { %2910 = vmatprep.subr.bf16.mxu0 %v3123_v9 }
 0xe38   : > { %2901 = vmatmul.mubr.msk.bf16.vlgmr.msra.gmra.mrb[40].mxu0 %vm538_vm0, %v3505_v10 }
 0xe39   : > { %2912 = vmatprep.mubr.msk.bf16.mxu0 %vm3124_vm1, %v3123_v9 }
 0xefb   : > { %v1744_v39 = vpop.f32.mrb[32].mxu0 }
 0xefc   : > { %v1745_v40 = vadd.f32 %v1744_v39, %v3370_v51  ;;  %v2872_v41 = vpop.f32.mrb[33].mxu0 }
 0xefd   : > { %v1747_v42 = vpop.f32.mrb[34].mxu0 }
 0xefe   : > { %v2873_v43 = vpop.f32.mrb[35].mxu0  ;;  %v1751_v44 = vsel %vm1750_vm6, %v1745_v40, -inf }
 0xeff   : > { %1752 = vmax.xlane.f32.xlu0 %v1751_v44 }
 0xf03   : > { %v1867_v45 = vpop.f32.mrb[36].mxu0 }
 0xf04   : > { %v2886_v46 = vpop.f32.mrb[37].mxu0 }
 0xf05   : > { %v1870_v47 = vpop.f32.mrb[38].mxu0 }
 0xf06   : > { %v2887_v48 = vpop.f32.mrb[39].mxu0 }
 0xf0b   : > { %v1997_v50 = vpop.f32.mrb[40].mxu0 }
 0xf0c   : > { %v1998_v52 = vadd.f32 %v2622_v49, %v1997_v50  ;;  %v2902_v53 = vpop.f32.mrb[41].mxu0  ;;  %v2634_v49 = vld [vmem:[%s3723_s7 + $0x1] sm:$0x1] }
 0xf0d   : > { %v2000_v54 = vpop.f32.mrb[42].mxu0 }
 0xf0e   : > { %v2063_v55 = vpack.c.bf16 %v1998_v52, %v1998_v52  ;;  %v2903_v56 = vpop.f32.mrb[43].mxu0 }
 0xf10   : > { %v2068_v57 = vsel %vm830_vm2, %v2063_v55, 0 }
 0xf11   : > { %2911 = vmatpush3.bf16.msra.mxu0 %v2068_v57 }
 0xf12   : > { %2922 = vmatprep.subr.bf16.mxu0 %v3123_v9 }
 0xf8c   : > { %v1753_v58 = vpop.xlane.xlu0 %1752 }
 0xf8d   : > { %v1754_v59 = vsub.f32 %v1745_v40, %v1753_v58 }
 0xf8f   : > { %v1755_v60 = vmul.f32 1.442695, %v1754_v59 }
 0xf91   : > { %3045 = vpow2.f32 %v1755_v60 }
 0xf9b   : > { %v3046_v61 = vpop.eup %3045 }
 0xf9c   : > { %v1757_v62 = vsel %vm1750_vm6, %v3046_v61, 0.0 }
 0xf9d   : > { %1758 = vadd.xlane.f32.xlu1 %v1757_v62 }
0x102a   : > { %v1759_v63 = vpop.xlane.xlu1 %1758 }
0x102b   : > { %3047 = vrcp.f32 %v1759_v63  ;;  %v3023_v63 = vld [vmem:[%s3726_s10 + $0x10] sm:$0xff]  }
0x1035   : > { %v3048_v0 = vpop.eup %3047 }
0x1036   : > { %v1761_v1 = vmul.f32 %v3048_v0, %v3046_v61 }
0x1038   : > { %v1762_v3 = vpack.c.bf16 %v1761_v1, %v1761_v1 }
0x103a   : > { %2877 = vmatmul.mubr.msk.bf16.vlgmr.msra.gmra.mrb[36].mxu1 %vm813_vm4, %v1762_v3 }
0x103b   : > { %2889 = vmatpush3.bf16.msra.mxu1 %v3019_v2  ;;  %2892 = vmatprep.mubr.msk.bf16.mxu1 %vm3124_vm1, %v3123_v9 }
0x103c   : > { %2890 = vmatprep.subr.bf16.mxu1 %v3123_v9 }
0x103f   : > { %2891 = vmatpush3.bf16.msra.mxu1 %v3020_v4  ;;  %v2635_v4 = vld [vmem:[%s3724_s8 + $0x1] sm:$0x1] }
0x1040   : > { %2904 = vmatprep.subr.bf16.mxu1 %v3123_v9 }
0x1042   : > { %2893 = vmatmul.mubr.msk.bf16.vlgmr.msra.gmra.mrb[40].mxu1 %vm538_vm0, %v3505_v10  ;;  %v2604_v10 = vld [vmem:[%s3721_s5 + $0x7] sm:$0x1] }
0x1043   : > { %2906 = vmatprep.mubr.msk.bf16.mxu1 %vm3124_vm1, %v3123_v9  ;;  %v1868_v19 = vadd.f32 %v2604_v10, %v1867_v45 }
0x1045   : > { %v2003_v21 = vpack.c.bf16 %v1868_v19, %v1868_v19 }
0x110d   : > { %v1804_v5 = vpop.f32.mrb[36].mxu1 }
0x110e   : > { %v2878_v6 = vpop.f32.mrb[37].mxu1  ;;  %v1810_v38 = vpack.c.bf16 %v1804_v5, %v1804_v5 }
0x110f   : > { %v1807_v8 = vpop.f32.mrb[38].mxu1  ;;  %v2636_v6 = vld [vmem:[%s3725_s9 + $0x1] sm:$0x1] }
0x1110   : > { %v2879_v11 = vpop.f32.mrb[39].mxu1 }
0x1115   : > { %v1932_v13 = vpop.f32.mrb[40].mxu1 }
0x1116   : > { %v1933_v20 = vadd.f32 %v2613_v12, %v1932_v13  ;;  %v2894_v14 = vpop.f32.mrb[41].mxu1  ;;  %v3025_v13 = vld [vmem:[%s3728_s12 + $0x20] sm:$0xff]  }
0x1117   : > { %v1935_v15 = vpop.f32.mrb[42].mxu1  ;;  %v3027_v14 = vld [vmem:[%s3728_s12 + $0x30] sm:$0xff]  }
0x1118   : > { %v2004_v16 = vpack.c.bf16 %v1933_v20, %v1933_v20  ;;  %v2895_v17 = vpop.f32.mrb[43].mxu1  ;;  %v3026_v20 = vld [vmem:[%s3728_s12 + $0x28] sm:$0xff]   ;;  %v3028_v15 = vld [vmem:[%s3728_s12 + $0x38] sm:$0xff]  }
0x111a   : > { %v2009_v18 = vsel %vm766_vm3, %v2004_v16, 0  ;;  %v2641_v16 = vld [vmem:[%s3727_s11 + $0x1] sm:$0x1] }
0x111b   : > { %2905 = vmatpush3.bf16.xpose.msra.mxu1 %v2009_v18 }
0x111c   : > { %2916 = vmatprep.subr.bf16.mxu1 %v3123_v9 }
0x1122   : > { %2907 = vmatmul.mubr.msk.bf16.vlgmr.msra.gmra.mrb[44].mxu1 %vm766_vm3, %v2003_v21 }
0x1123   : > { %2918 = vmatprep.mubr.msk.bf16.mxu1 %vm3124_vm1, %v3123_v9  ;;  %2917 = vmatpush3.bf16.msra.mxu1 %v3022_v33 }
0x1124   : > { %2928 = vmatprep.subr.bf16.mxu1 %v3123_v9 }
0x11f5   : > { %v2045_v23 = vpop.f32.mrb[44].mxu1 }
0x11f6   : > { %v2046_v24 = vadd.f32 %v2045_v23, %v3370_v51  ;;  %v2908_v25 = vpop.f32.mrb[45].mxu1 }
0x11f7   : > { %v2048_v26 = vpop.f32.mrb[46].mxu1 }
0x11f8   : > { %v2909_v27 = vpop.f32.mrb[47].mxu1  ;;  %v2051_v28 = vsel %vm1750_vm6, %v2046_v24, -inf }
0x11f9   : > { %2052 = vmax.xlane.f32.xlu0 %v2051_v28 }
0x1286   : > { %v2053_v29 = vpop.xlane.xlu0 %2052 }
0x1287   : > { %v2054_v30 = vsub.f32 %v2046_v24, %v2053_v29 }
0x1289   : > { %v2055_v22 = vmul.f32 1.442695, %v2054_v30 }
0x128b   : > { %3049 = vpow2.f32 %v2055_v22 }
0x1295   : > { %v3050_v31 = vpop.eup %3049 }
0x1296   : > { %v2057_v32 = vsel %vm1750_vm6, %v3050_v31, 0.0 }
0x1297   : > { %2058 = vadd.xlane.f32.xlu1 %v2057_v32 }
0x1324   : > { %v2059_v51 = vpop.xlane.xlu1 %2058 }
0x1325   : > { %3051 = vrcp.f32 %v2059_v51 }
0x132f   : > { %v3052_v34 = vpop.eup %3051 }
0x1330   : > { %v2061_v35 = vmul.f32 %v3052_v34, %v3050_v31  ;;  %v2653_v31 = vld [vmem:[%s3729_s13 + $0x1] sm:$0x1] }
0x1332   : > { %v2062_v37 = vpack.c.bf16 %v2061_v35, %v2061_v35 }
0x1334   : > { %2913 = vmatmul.mubr.msk.bf16.vlgmr.msra.gmra.mrb[44].mxu0 %vm813_vm4, %v2062_v37 }
0x1335   : > { %2923 = vmatpush3.bf16.msra.mxu0 %v3021_v36  ;;  %2924 = vmatprep.mubr.msk.bf16.mxu0 %vm3124_vm1, %v3123_v9 }
0x1336   : > { %2936 = vmatprep.subr.bf16.mxu0 %v3123_v9 }
0x133c   : > { %2925 = vmatmul.mubr.msk.bf16.vlgmr.msra.gmra.mrb[48].mxu0 %vm766_vm3, %v1810_v38 }
0x133d   : > { %2944 = vmatprep.mubr.msk.bf16.mxu0 %vm3124_vm1, %v3123_v9  ;;  %2937 = vmatpush3.bf16.msra.mxu0 %v3025_v13 }
0x133e   : > { %2938 = vmatprep.subr.bf16.mxu0 %v3123_v9 }
0x1341   : > { %2939 = vmatpush3.bf16.msra.mxu0 %v3026_v20 }
0x1342   : > { %2940 = vmatprep.subr.bf16.mxu0 %v3123_v9 }
0x1345   : > { %2941 = vmatpush3.bf16.msra.mxu0 %v3027_v14 }
0x1346   : > { %2942 = vmatprep.subr.bf16.mxu0 %v3123_v9 }
0x1349   : > { %2943 = vmatpush3.bf16.msra.mxu0 %v3028_v15 }
0x1407   : > { %v2104_v39 = vpop.f32.mrb[44].mxu0 }
0x1408   : > { %v2110_v40 = vpack.c.bf16 %v2104_v39, %v2104_v39  ;;  %v2914_v41 = vpop.f32.mrb[45].mxu0 }
0x1409   : > { %v2107_v42 = vpop.f32.mrb[46].mxu0 }
0x140a   : > { %v2915_v43 = vpop.f32.mrb[47].mxu0  ;;  %2919 = vmatmul.mubr.msk.bf16.vlgmr.msra.gmra.mrb[48].mxu1 %vm766_vm3, %v2110_v40 }
0x140b   : > { %2932 = vmatprep.mubr.msk.bf16.mxu1 %vm3124_vm1, %v3123_v9  ;;  %2929 = vmatpush3.bf16.msra.mxu1 %v3023_v63 }
0x140c   : > { %2930 = vmatprep.subr.bf16.mxu1 %v3123_v9 }
0x140f   : > { %v2206_v44 = vpop.f32.mrb[48].mxu0 }
0x1410   : > { %v2926_v45 = vpop.f32.mrb[49].mxu0 }
0x1411   : > { %v2209_v46 = vpop.f32.mrb[50].mxu0 }
0x1412   : > { %v2927_v47 = vpop.f32.mrb[51].mxu0 }
0x1413   : > { %v2659_v47 = vld [vmem:[%s3730_s14 + $0x1] sm:$0x1] }
0x14dd   : > { %v2157_v48 = vpop.f32.mrb[48].mxu1 }
0x14de   : > { %v2207_v50 = vadd.f32 %v2206_v44, %v2157_v48  ;;  %v2920_v52 = vpop.f32.mrb[49].mxu1 }
0x14df   : > { %v2160_v53 = vpop.f32.mrb[50].mxu1 }
0x14e0   : > { %v2214_v54 = vadd.f32 %v2634_v49, %v2207_v50  ;;  %v2921_v55 = vpop.f32.mrb[51].mxu1  ;;  %v2660_v49 = vld [vmem:[%s3731_s15 + $0x1] sm:$0x1] }
0x14e2   : > { %v2215_v56 = vadd.f32 %v2214_v54, %v3498_v7  ;;  %v3024_v7 = vld [vmem:[%s3726_s10 + $0x18] sm:$0xff]  }
0x14e3   : > { %2931 = vmatpush3.bf16.msra.mxu1 %v3024_v7 }
0x14e4   : > { %v2221_v57 = vsel %vm2220_vm7, %v2215_v56, 0.0 }
0x14e5   : > { %2222 = vadd.xlane.f32.xlu0 %v2221_v57 }
0x1572   : > { %v2223_v58 = vpop.xlane.xlu0 %2222 }
0x1573   : > { %v2224_v59 = vmul.f32 0.03125, %v2223_v58 }
0x1575   : > { %v2225_v60 = vsub.f32 %v2215_v56, %v2224_v59 }
0x1577   : > { %v2226_v61 = vmul.f32 %v2225_v60, %v2225_v60 }
0x1579   : > { %v2227_v62 = vsel %vm2220_vm7, %v2226_v61, 0.0 }
0x157a   : > { %2228 = vadd.xlane.f32.xlu1 %v2227_v62 }
0x1607   : > { %v2229_v0 = vpop.xlane.xlu1 %2228 }
0x1608   : > { %v2230_v1 = vmul.f32 0.03125, %v2229_v0 }
0x160a   : > { %v2231_v2 = vadd.f32 1e-12, %v2230_v1 }
0x160c   : > { %3053 = vrsqrt.f32 %v2231_v2 }
0x1616   : > { %v3054_v3 = vpop.eup %3053 }
0x1617   : > { %v2233_v5 = vmul.f32 %v3054_v3, %v2225_v60 }
0x1619   : > { %v2234_v8 = vmul.f32 %v2635_v4, %v2233_v5 }
0x161b   : > { %v2235_v11 = vadd.f32 %v2636_v6, %v2234_v8 }
0x161d   : > { %v2236_v12 = vpack.c.bf16 %v2235_v11, %v2235_v11 }
0x161f   : > { %2933 = vmatmul.mubr.msk.bf16.vlgmr.msra.gmra.mrb[52].mxu1 %vm538_vm0, %v2236_v12 }
0x16f2   : > { %v2293_v17 = vpop.f32.mrb[52].mxu1 }
0x16f3   : > { %v2294_v10 = vadd.f32 %v2641_v16, %v2293_v17  ;;  %v2934_v18 = vpop.f32.mrb[53].mxu1 }
0x16f4   : > { %v2296_v19 = vpop.f32.mrb[54].mxu1 }
0x16f5   : > { %v2299_v21 = vmul.f32 %v2294_v10, %v2294_v10  ;;  %v2935_v23 = vpop.f32.mrb[55].mxu1 }
0x16f7   : > { %v2300_v24 = vmul.f32 %v2299_v21, %v2294_v10 }
0x16f9   : > { %v2301_v25 = vmul.f32 0.044715, %v2300_v24 }
0x16fb   : > { %v2302_v26 = vadd.f32 %v2301_v25, %v2294_v10 }
0x16fd   : > { %v2303_v27 = vmul.f32 0.7978846, %v2302_v26 }
0x16ff   : > { %3055 = vtanh.f32 %v2303_v27 }
0x1709   : > { %v3056_v9 = vpop.eup %3055 }
0x170a   : > { %v2305_v28 = vadd.f32 1.0, %v3056_v9 }
0x170c   : > { %v2306_v29 = vmul.f32 0.5, %v2305_v28 }
0x170e   : > { %v2307_v30 = vmul.f32 %v2306_v29, %v2294_v10 }
0x1710   : > { %v2308_v22 = vpack.c.bf16 %v2307_v30, %v2307_v30 }
0x1712   : > { %2945 = vmatmul.mubr.msk.bf16.vlgmr.msra.gmra.mrb[52].mxu0 %vm1435_vm5, %v2308_v22 }
0x17e5   : > { %v2381_v32 = vpop.f32.mrb[52].mxu0 }
0x17e6   : > { %v2382_v33 = vadd.f32 %v2653_v31, %v2381_v32  ;;  %v2946_v51 = vpop.f32.mrb[53].mxu0 }
0x17e7   : > { %v2384_v34 = vpop.f32.mrb[54].mxu0 }
0x17e8   : > { %v2947_v35 = vpop.f32.mrb[55].mxu0  ;;  %v2387_v36 = vadd.f32 %v2382_v33, %v2235_v11 }
0x17ea   : > { %v2392_v37 = vsel %vm2220_vm7, %v2387_v36, 0.0 }
0x17eb   : > { %2393 = vadd.xlane.f32.xlu0 %v2392_v37 }
0x1878   : > { %v2394_v38 = vpop.xlane.xlu0 %2393 }
0x1879   : > { %v2395_v39 = vmul.f32 0.03125, %v2394_v38 }
0x187b   : > { %v2396_v40 = vsub.f32 %v2387_v36, %v2395_v39 }
0x187d   : > { %v2397_v41 = vmul.f32 %v2396_v40, %v2396_v40 }
0x187f   : > { %v2398_v42 = vsel %vm2220_vm7, %v2397_v41, 0.0 }
0x1880   : > { %2399 = vadd.xlane.f32.xlu1 %v2398_v42 }
0x190d   : > { %v2400_v43 = vpop.xlane.xlu1 %2399 }
0x190e   : > { %v2401_v44 = vmul.f32 0.03125, %v2400_v43 }
0x1910   : > { %v2402_v45 = vadd.f32 1e-12, %v2401_v44 }
0x1912   : > { %3057 = vrsqrt.f32 %v2402_v45 }
0x191c   : > { %v3058_v46 = vpop.eup %3057 }
0x191d   : > { %v2404_v48 = vmul.f32 %v3058_v46, %v2396_v40 }
0x191f   : > { %v2405_v50 = vmul.f32 %v2659_v47, %v2404_v48 }
0x1921   : > { %v2406_v52 = vadd.f32 %v2660_v49, %v2405_v50 }
0x1923   : > { %2407 = vst.msk [vmem:[%s524_s30] sm:$0x1] %vm2220_vm7, %v2406_v52 }
0x1924   : > { %3072 = shalt.err (!%p3069_p3)
}
0x1925   : > { %s3073_s19 = scalar_lea.hbm %s3673_s1, 16  ;;  %s3077_s18 = scalar_lea.hbm %s3732_s16, 32 }
0x1926   : > { %p3074_p4 = scmp.ne.s32.totalorder %s3673_s1, %s3073_s19  ;;  %p3078_p9 = scmp.lt.u32.totalorder %s3673_s1, %s3732_s16 }
0x1927   : > { %p3079_p10 = scmp.lt.u32.totalorder %s3077_s18, %s3073_s19  ;;  %p3081_p12 = scmp.lt.u32.totalorder %s3073_s19, %s3673_s1 }
0x1928   : > { %p3075_p7 = pnand %p3074_p4, %p3249_p5 }
0x1929   : > { %p3080_p11 = por %p3079_p10, %p3078_p9 }
0x192a   : > { %p3076_p8 = pneg %p3075_p7 }
0x192b   : > { %p3082_p13 = por %p3081_p12, %p3080_p11 }
0x192d   : > { %p3083_p0 = pnand %p3082_p13, %p3076_p8 }
0x192f   : > { %3086 = shalt.err (!%p3083_p0)
}
0x1930   : > { %2948 = dma.vmem_to_hbm [thread:$0]  (%p3249_p5), %s3675_s27, 16, %s3673_s1, %s2409_s28  }
0x1931 PF: > { %p2954_p1 = scmp.ge.s32.totalorder %s3121_s24, 2  ;;  %s2433_s20 = sand.u32 1, %s3109_s21  }
0x1932   : > { %s2434_s26 = scalar_lea.sflag [#allocation3], %s2433_s20 }
0x1933   : > { %p2951_p2 = pnand %p2954_p1, %p3253_p6 }
0x1935   : > { %3104 = dma.done.wait (!%p2951_p2), %s2434_s26, 16  }
0x1936   : > { %3106 = vsyncadd (!%p2951_p2), %s2434_s26, 4294967280  ;;  %s3748_s24 = sld [smem:[#allocation6_spill]]  ;;  %s3749_s19 = sld [smem:[#allocation5_spill]] }
0x1937   : > { %s3750_s23 = sld [smem:[#allocation7_spill]]  ;;  %s3751_s21 = smov %s3113_s22 }
0x193c   : > { %p26_p3 = scmp.ge.s32.totalorder %s3748_s24, 4   ;;  %s3752_s22 = smov %s3749_s19 }
0x193e   :  { %28 = sbr.rel (!%p26_p3) target bundleno = 6 (0x6), region = 156 }
0x1945   :  { %2438 = vsyncpa [#allocation3], 1 }
0x1946   :  { %2440 = vsyncpa [#allocation3 + $0x1], 1 }

</bundles_post_ra>
